<compile_context>
chip_gen: v7x
topology: tpu7x:2x2x1
jax: 0.10.0
libtpu: 0.0.40
codegen_flags: <defaults>
</compile_context>

<pallas_src>
import functools

import jax
import jax.numpy as jnp
from jax.experimental import pallas as pl
from jax.experimental.pallas import tpu as pltpu


# ----------------------------- in-kernel helpers -----------------------------

def _layer_norm(x, g, b, eps=1e-5):
    mu = jnp.mean(x, axis=-1, keepdims=True)
    var = jnp.mean((x - mu) ** 2, axis=-1, keepdims=True)
    return (x - mu) * jax.lax.rsqrt(var + eps) * g + b


def _to_heads(x, num_heads):
    # (N, D) -> (H, N, hd)
    n, d = x.shape
    hd = d // num_heads
    return jnp.transpose(x.reshape(n, num_heads, hd), (1, 0, 2))


def _from_heads(x):
    # (H, N, hd) -> (N, H*hd)
    h, n, hd = x.shape
    return jnp.transpose(x, (1, 0, 2)).reshape(n, h * hd)


def _attend(q_heads, k_heads, v_heads, wo, mask_bias, compute_dtype):
    """q_heads: (H, Tq, hd) f32.  k/v_heads: (H, S, hd) in compute dtype.
    wo: (D, D) compute dtype.  mask_bias: (Tq, S) additive f32 or None.
    Returns (Tq, D) f32."""
    s = jnp.einsum('htk,hsk->hts', q_heads.astype(compute_dtype), k_heads,
                   preferred_element_type=jnp.float32)          # (H, Tq, S) f32
    if mask_bias is not None:
        s = s + mask_bias[None]

    m = jnp.max(s, axis=-1, keepdims=True)
    p = jnp.exp(s - m)
    denom = jnp.sum(p, axis=-1, keepdims=True)
    if compute_dtype == jnp.float32:
        p = p / denom                                   # exact (debug / bit-accuracy path)
    else:
        p = p * pl.reciprocal(denom, approx=True)       # EUP slot, ~free on bf16 path

    o = jnp.einsum('hts,hsk->htk', p.astype(compute_dtype), v_heads,
                   preferred_element_type=jnp.float32)          # (H, Tq, hd) f32
    o2 = _from_heads(o).astype(compute_dtype)                   # (Tq, D)
    return jnp.dot(o2, wo, preferred_element_type=jnp.float32)  # (Tq, D) f32


# --------------------------------- kernel ------------------------------------

def decoder_block_kernel(x_ref, enc_ref,
                         ln1g_ref, ln1b_ref, wq1_ref, wkv1_ref, wo1_ref,
                         ln2g_ref, ln2b_ref, wq2_ref, wkv2_ref, wo2_ref,
                         ln3g_ref, ln3b_ref, w1_ref, b1_ref, w2_ref, b2_ref,
                         out_ref,
                         lnx_s, k1_s, v1_s, k2_s, v2_s,
                         *, num_heads, compute_dtype):
    T = x_ref.shape[1]            # padded seq length (multiple of Tq)
    D = x_ref.shape[2]
    Tq = out_ref.shape[1]

    qb = pl.program_id(1)
    q_start = pl.multiple_of(qb * Tq, Tq)

    # ---- once per batch element: cache LN(x), self-attn K/V, enc-dec K/V ----
    @pl.when(qb == 0)
    def _precompute():
        x_full = x_ref[0]                                           # (T, D) f32
        h_full = _layer_norm(x_full, ln1g_ref[...], ln1b_ref[...])
        h_c = h_full.astype(compute_dtype)
        lnx_s[...] = h_c
        kv1 = jnp.dot(h_c, wkv1_ref[...],
                      preferred_element_type=jnp.float32)           # (T, 2D)
        k1_s[...] = _to_heads(kv1[:, :D], num_heads).astype(compute_dtype)
        v1_s[...] = _to_heads(kv1[:, D:], num_heads).astype(compute_dtype)

        enc = enc_ref[0].astype(compute_dtype)                      # (S, D)
        kv2 = jnp.dot(enc, wkv2_ref[...],
                      preferred_element_type=jnp.float32)           # (S, 2D)
        k2_s[...] = _to_heads(kv2[:, :D], num_heads).astype(compute_dtype)
        v2_s[...] = _to_heads(kv2[:, D:], num_heads).astype(compute_dtype)

    # residual rows of this query block (padding in the wrapper guarantees
    # q_start + Tq <= T, so this slice never reads OOB)
    x_q = x_ref[0, pl.ds(q_start, Tq), :]                           # (Tq, D) f32

    # causal additive mask built in-kernel (padded key rows are > any real row,
    # so they are masked out for every real query row)
    rows = q_start + jax.lax.broadcasted_iota(jnp.int32, (Tq, T), 0)
    cols = jax.lax.broadcasted_iota(jnp.int32, (Tq, T), 1)
    causal_bias = jnp.where(cols > rows, jnp.float32(-1e30), jnp.float32(0.0))

    # --- masked self-attention (is_first=False: pre-norm residual) ---
    h_q = lnx_s[pl.ds(q_start, Tq), :]                              # cached LN rows
    q1 = jnp.dot(h_q, wq1_ref[...], preferred_element_type=jnp.float32)
    attn = _attend(_to_heads(q1, num_heads), k1_s[...], v1_s[...],
                   wo1_ref[...], causal_bias, compute_dtype)
    x_q = x_q + attn

    # --- encoder-decoder attention (no mask) ---
    h = _layer_norm(x_q, ln2g_ref[...], ln2b_ref[...]).astype(compute_dtype)
    q2 = jnp.dot(h, wq2_ref[...], preferred_element_type=jnp.float32)
    attn = _attend(_to_heads(q2, num_heads), k2_s[...], v2_s[...],
                   wo2_ref[...], None, compute_dtype)
    x_q = x_q + attn

    # --- FFN: Linear(D,4D) -> ReLU -> Linear(4D,D) ---
    h = _layer_norm(x_q, ln3g_ref[...], ln3b_ref[...]).astype(compute_dtype)
    f = jnp.dot(h, w1_ref[...], preferred_element_type=jnp.float32) + b1_ref[...]
    f = jnp.maximum(f, 0.0)
    f = jnp.dot(f.astype(compute_dtype), w2_ref[...],
                preferred_element_type=jnp.float32) + b2_ref[...]

    out_ref[0] = (x_q + f).astype(out_ref.dtype)


# --------------------------------- wrapper -----------------------------------

def transformer_decoder_block(x, enc, params, *, num_heads,
                              compute_dtype=jnp.bfloat16, block_q=128,
                              out_dtype=jnp.float32):
    B, T, D = x.shape
    S = enc.shape[1]
    assert D % num_heads == 0
    hd = D // num_heads
    p = params

    # pad T to a multiple of the query block so the in-kernel pl.ds never
    # reads past the valid VMEM tile (padded keys are causally masked).
    Tq = min(T, block_q)
    T_pad = Tq * pl.cdiv(T, Tq)
    if T_pad != T:
        x = jnp.pad(x, ((0, 0), (0, T_pad - T), (0, 0)))

    # NOTE: the PyTorch module scales queries by d_model**-0.5 (d_q captured
    # before the head split), NOT head_dim**-0.5. Folded into W_q here (free).
    scale = float(D) ** -0.5
    wdt = compute_dtype

    weight_args = (
        p['ln1_g'], p['ln1_b'],
        (p['wq1'] * scale).astype(wdt),
        jnp.concatenate([p['wk1'], p['wv1']], axis=1).astype(wdt),   # fused (D, 2D)
        p['wo1'].astype(wdt),
        p['ln2_g'], p['ln2_b'],
        (p['wq2'] * scale).astype(wdt),
        jnp.concatenate([p['wk2'], p['wv2']], axis=1).astype(wdt),   # fused (D, 2D)
        p['wo2'].astype(wdt),
        p['ln3_g'], p['ln3_b'],
        p['w_ffn1'].astype(wdt), p['b_ffn1'],
        p['w_ffn2'].astype(wdt), p['b_ffn2'],
    )

    grid = (B, T_pad // Tq)

    def w_spec(w):
        nd = w.ndim

        def idx(b, qb):
            return (0,) * nd

        # constant index map -> single buffer (halves resident weight VMEM)
        return pl.BlockSpec(w.shape, idx, pipeline_mode=pl.Buffered(1))

    kernel = functools.partial(decoder_block_kernel, num_heads=num_heads,
                               compute_dtype=compute_dtype)

    out = pl.pallas_call(
        kernel,
        out_shape=jax.ShapeDtypeStruct((B, T_pad, D), out_dtype),
        grid=grid,
        in_specs=[
            pl.BlockSpec((1, T_pad, D), lambda b, qb: (b, 0, 0)),   # x (K/V source + residual)
            pl.BlockSpec((1, S, D), lambda b, qb: (b, 0, 0)),       # encoder_output
        ] + [w_spec(w) for w in weight_args],
        out_specs=pl.BlockSpec((1, Tq, D), lambda b, qb: (b, qb, 0)),
        scratch_shapes=[
            pltpu.VMEM((T_pad, D), wdt),                 # cached LN(x)
            pltpu.VMEM((num_heads, T_pad, hd), wdt),     # self-attn K
            pltpu.VMEM((num_heads, T_pad, hd), wdt),     # self-attn V
            pltpu.VMEM((num_heads, S, hd), wdt),         # enc-dec K
            pltpu.VMEM((num_heads, S, hd), wdt),         # enc-dec V
        ],
        compiler_params=pltpu.CompilerParams(
            # K/V scratch is cached across qb -> qb must be "arbitrary";
            # batch stays "parallel" for v7x megacore sharding.
            dimension_semantics=("parallel", "arbitrary"),
            vmem_limit_bytes=48 * 1024 * 1024),
    )(x, enc, *weight_args)

    if T_pad != T:
        out = out[:, :T, :]
    return out


# --------------------------- parameter construction ---------------------------

def init_params(key, d_model, gain=1.0):
    D = d_model
    keys = jax.random.split(key, 12)

    def xavier(k, fan_in, fan_out, g=1.0):
        bound = g * (6.0 / (fan_in + fan_out)) ** 0.5
        # stored as (in, out), i.e. transposed relative to nn.Linear.weight
        return jax.random.uniform(k, (fan_in, fan_out), jnp.float32, -bound, bound)

    def kaiming(k, fan_in, fan_out):
        bound = (6.0 / fan_in) ** 0.5
        return jax.random.uniform(k, (fan_in, fan_out), jnp.float32, -bound, bound)

    return {
        'ln1_g': jnp.ones((1, D), jnp.float32), 'ln1_b': jnp.zeros((1, D), jnp.float32),
        'wq1': xavier(keys[0], D, D), 'wk1': xavier(keys[1], D, D),
        'wv1': xavier(keys[2], D, D), 'wo1': xavier(keys[3], D, D, gain),
        'ln2_g': jnp.ones((1, D), jnp.float32), 'ln2_b': jnp.zeros((1, D), jnp.float32),
        'wq2': xavier(keys[4], D, D), 'wk2': xavier(keys[5], D, D),
        'wv2': xavier(keys[6], D, D), 'wo2': xavier(keys[7], D, D, gain),
        'ln3_g': jnp.ones((1, D), jnp.float32), 'ln3_b': jnp.zeros((1, D), jnp.float32),
        'w_ffn1': kaiming(keys[8], D, 4 * D), 'b_ffn1': jnp.zeros((1, 4 * D), jnp.float32),
        'w_ffn2': xavier(keys[9], 4 * D, D, gain), 'b_ffn2': jnp.zeros((1, D), jnp.float32),
    }


# ------------------------------ pure-JAX reference ----------------------------

def ref_forward(x, enc, p, num_heads):
    B, T, D = x.shape
    hd = D // num_heads

    def ln(v, g, b, eps=1e-5):
        mu = jnp.mean(v, axis=-1, keepdims=True)
        var = jnp.mean((v - mu) ** 2, axis=-1, keepdims=True)
        return (v - mu) / jnp.sqrt(var + eps) * g + b

    def mha(q_in, kv_in, wq, wk, wv, wo, mask):
        q = (q_in @ wq).reshape(B, -1, num_heads, hd).transpose(0, 2, 1, 3)
        k = (kv_in @ wk).reshape(B, -1, num_heads, hd).transpose(0, 2, 1, 3)
        v = (kv_in @ wv).reshape(B, -1, num_heads, hd).transpose(0, 2, 1, 3)
        s = jnp.einsum('bhtd,bhsd->bhts', q * D ** (-0.5), k)
        if mask is not None:
            s = jnp.where(mask, -jnp.inf, s)
        a = jax.nn.softmax(s, axis=-1)
        o = jnp.einsum('bhts,bhsd->bhtd', a, v).transpose(0, 2, 1, 3).reshape(B, -1, D)
        return o @ wo

    tri = jnp.triu(jnp.ones((T, T), dtype=bool), k=1)

    h = ln(x, p['ln1_g'], p['ln1_b'])
    x = x + mha(h, h, p['wq1'], p['wk1'], p['wv1'], p['wo1'], tri)
    h = ln(x, p['ln2_g'], p['ln2_b'])
    x = x + mha(h, enc, p['wq2'], p['wk2'], p['wv2'], p['wo2'], None)
    h = ln(x, p['ln3_g'], p['ln3_b'])
    h = jnp.maximum(h @ p['w_ffn1'] + p['b_ffn1'], 0.0) @ p['w_ffn2'] + p['b_ffn2']
    return x + h


# ----------------------------------- main -------------------------------------

if __name__ == "__main__":
    key = jax.random.PRNGKey(0)
    kx, kenc, kp, kx2 = jax.random.split(key, 4)

    # --- config 1: single query block ---
    B, T, S, D, H = 2, 8, 8, 32, 4
    x = jax.random.normal(kx, (B, T, D), jnp.float32)
    enc = jax.random.normal(kenc, (B, S, D), jnp.float32)
    params = init_params(kp, D)
    ref = ref_forward(x, enc, params, H)

    # f32 debug path (exact softmax division) -- tight tolerance
    out_f32 = jax.block_until_ready(
        transformer_decoder_block(x, enc, params, num_heads=H,
                                  compute_dtype=jnp.float32))
    assert out_f32.shape == (B, T, D)
    err = float(jnp.max(jnp.abs(out_f32 - ref)))
    assert err < 2e-3, f"f32 path max abs err {err}"

    # default bf16 MXU path (LN/softmax/residuals stay f32) -- loose sanity check
    out_bf16 = jax.block_until_ready(
        transformer_decoder_block(x, enc, params, num_heads=H))
    err_bf16 = float(jnp.max(jnp.abs(out_bf16 - ref)))
    assert err_bf16 < 0.25, f"bf16 path max abs err {err_bf16}"

    # --- config 2: multiple query blocks + T padding (exercises the
    #     cached-K/V-across-qb path and the causal mask offsets) ---
    T2 = 12
    x2 = jax.random.normal(kx2, (B, T2, D), jnp.float32)
    ref2 = ref_forward(x2, enc, params, H)
    out2 = jax.block_until_ready(
        transformer_decoder_block(x2, enc, params, num_heads=H,
                                  compute_dtype=jnp.float32, block_q=8))
    assert out2.shape == (B, T2, D)
    err2 = float(jnp.max(jnp.abs(out2 - ref2)))
    assert err2 < 2e-3, f"multi-block f32 path max abs err {err2}"

    print("KERNEL_OK")
</pallas_src>

<mosaic_0001>
module attributes {stable_mosaic.version = 11 : i64} {
  func.func @decoder_block_kernel(%arg0: i32, %arg1: i32, %arg2: memref<1x8x32xf32, #tpu.memory_space<vmem>>, %arg3: memref<1x8x32xf32, #tpu.memory_space<vmem>>, %arg4: memref<1x32xf32, #tpu.memory_space<vmem>>, %arg5: memref<1x32xf32, #tpu.memory_space<vmem>>, %arg6: memref<32x32xf32, #tpu.memory_space<vmem>>, %arg7: memref<32x64xf32, #tpu.memory_space<vmem>>, %arg8: memref<32x32xf32, #tpu.memory_space<vmem>>, %arg9: memref<1x32xf32, #tpu.memory_space<vmem>>, %arg10: memref<1x32xf32, #tpu.memory_space<vmem>>, %arg11: memref<32x32xf32, #tpu.memory_space<vmem>>, %arg12: memref<32x64xf32, #tpu.memory_space<vmem>>, %arg13: memref<32x32xf32, #tpu.memory_space<vmem>>, %arg14: memref<1x32xf32, #tpu.memory_space<vmem>>, %arg15: memref<1x32xf32, #tpu.memory_space<vmem>>, %arg16: memref<32x128xf32, #tpu.memory_space<vmem>>, %arg17: memref<1x128xf32, #tpu.memory_space<vmem>>, %arg18: memref<128x32xf32, #tpu.memory_space<vmem>>, %arg19: memref<1x32xf32, #tpu.memory_space<vmem>>, %arg20: memref<1x8x32xf32, #tpu.memory_space<vmem>>, %arg21: memref<8x32xf32, #tpu.memory_space<vmem>>, %arg22: memref<4x8x8xf32, #tpu.memory_space<vmem>>, %arg23: memref<4x8x8xf32, #tpu.memory_space<vmem>>, %arg24: memref<4x8x8xf32, #tpu.memory_space<vmem>>, %arg25: memref<4x8x8xf32, #tpu.memory_space<vmem>>) attributes {dimension_semantics = [#tpu.dimension_semantics<parallel>, #tpu.dimension_semantics<arbitrary>], iteration_bounds = array<i64: 2, 1>, scalar_prefetch = 0 : i64, scratch_operands = 5 : i64, tpu.core_type = #tpu.core_type<tc>, window_params = [{transform_indices = @transform_0, window_bounds = array<i64: 1, 8, 32>}, {transform_indices = @transform_1, window_bounds = array<i64: 1, 8, 32>}, {pipeline_mode = #tpu.pipeline_mode<synchronous>, transform_indices = @transform_2, window_bounds = array<i64: 1, 32>}, {pipeline_mode = #tpu.pipeline_mode<synchronous>, transform_indices = @transform_3, window_bounds = array<i64: 1, 32>}, {pipeline_mode = #tpu.pipeline_mode<synchronous>, transform_indices = @transform_4, window_bounds = array<i64: 32, 32>}, {pipeline_mode = #tpu.pipeline_mode<synchronous>, transform_indices = @transform_5, window_bounds = array<i64: 32, 64>}, {pipeline_mode = #tpu.pipeline_mode<synchronous>, transform_indices = @transform_6, window_bounds = array<i64: 32, 32>}, {pipeline_mode = #tpu.pipeline_mode<synchronous>, transform_indices = @transform_7, window_bounds = array<i64: 1, 32>}, {pipeline_mode = #tpu.pipeline_mode<synchronous>, transform_indices = @transform_8, window_bounds = array<i64: 1, 32>}, {pipeline_mode = #tpu.pipeline_mode<synchronous>, transform_indices = @transform_9, window_bounds = array<i64: 32, 32>}, {pipeline_mode = #tpu.pipeline_mode<synchronous>, transform_indices = @transform_10, window_bounds = array<i64: 32, 64>}, {pipeline_mode = #tpu.pipeline_mode<synchronous>, transform_indices = @transform_11, window_bounds = array<i64: 32, 32>}, {pipeline_mode = #tpu.pipeline_mode<synchronous>, transform_indices = @transform_12, window_bounds = array<i64: 1, 32>}, {pipeline_mode = #tpu.pipeline_mode<synchronous>, transform_indices = @transform_13, window_bounds = array<i64: 1, 32>}, {pipeline_mode = #tpu.pipeline_mode<synchronous>, transform_indices = @transform_14, window_bounds = array<i64: 32, 128>}, {pipeline_mode = #tpu.pipeline_mode<synchronous>, transform_indices = @transform_15, window_bounds = array<i64: 1, 128>}, {pipeline_mode = #tpu.pipeline_mode<synchronous>, transform_indices = @transform_16, window_bounds = array<i64: 128, 32>}, {pipeline_mode = #tpu.pipeline_mode<synchronous>, transform_indices = @transform_17, window_bounds = array<i64: 1, 32>}, {transform_indices = @transform_18, window_bounds = array<i64: 1, 8, 32>}]} {
    %c8_i32 = arith.constant 8 : i32
    %0 = arith.muli %arg1, %c8_i32 : i32
    %1 = tpu.assume_multiple %0, 8 : i32
    %c0_i32 = arith.constant 0 : i32
    %2 = arith.cmpi eq, %arg1, %c0_i32 : i32
    %3 = arith.extui %2 : i1 to i32
    %c0_i32_0 = arith.constant 0 : i32
    %4 = arith.cmpi ne, %3, %c0_i32_0 : i32
    scf.if %4 {
      %c0_68 = arith.constant 0 : index
      %c0_69 = arith.constant 0 : index
      %c0_70 = arith.constant 0 : index
      %129 = vector.load %arg2[%c0_68, %c0_69, %c0_70] : memref<1x8x32xf32, #tpu.memory_space<vmem>>, vector<1x8x32xf32>
      %130 = vector.shape_cast %129 : vector<1x8x32xf32> to vector<8x32xf32>
      %c0_71 = arith.constant 0 : index
      %c0_72 = arith.constant 0 : index
      %131 = vector.load %arg4[%c0_71, %c0_72] : memref<1x32xf32, #tpu.memory_space<vmem>>, vector<1x32xf32>
      %c0_73 = arith.constant 0 : index
      %c0_74 = arith.constant 0 : index
      %132 = vector.load %arg5[%c0_73, %c0_74] : memref<1x32xf32, #tpu.memory_space<vmem>>, vector<1x32xf32>
      %cst_75 = arith.constant dense<0.000000e+00> : vector<8xf32>
      %133 = vector.multi_reduction <add>, %130, %cst_75 [1] : vector<8x32xf32> to vector<8xf32>
      %134 = vector.shape_cast %133 : vector<8xf32> to vector<8x1xf32>
      %cst_76 = arith.constant 3.200000e+01 : f32
      %135 = vector.broadcast %cst_76 : f32 to vector<8x1xf32>
      %136 = arith.divf %134, %135 : vector<8x1xf32>
      %137 = vector.broadcast %136 : vector<8x1xf32> to vector<8x32xf32>
      %138 = arith.subf %130, %137 : vector<8x32xf32>
      %139 = arith.mulf %138, %138 : vector<8x32xf32>
      %cst_77 = arith.constant dense<0.000000e+00> : vector<8xf32>
      %140 = vector.multi_reduction <add>, %139, %cst_77 [1] : vector<8x32xf32> to vector<8xf32>
      %141 = vector.shape_cast %140 : vector<8xf32> to vector<8x1xf32>
      %cst_78 = arith.constant 3.200000e+01 : f32
      %142 = vector.broadcast %cst_78 : f32 to vector<8x1xf32>
      %143 = arith.divf %141, %142 : vector<8x1xf32>
      %144 = vector.broadcast %136 : vector<8x1xf32> to vector<8x32xf32>
      %145 = arith.subf %130, %144 : vector<8x32xf32>
      %cst_79 = arith.constant 9.99999974E-6 : f32
      %146 = vector.broadcast %cst_79 : f32 to vector<8x1xf32>
      %147 = arith.addf %143, %146 : vector<8x1xf32>
      %148 = math.rsqrt %147 : vector<8x1xf32>
      %149 = vector.broadcast %148 : vector<8x1xf32> to vector<8x32xf32>
      %150 = arith.mulf %145, %149 : vector<8x32xf32>
      %151 = vector.broadcast %131 : vector<1x32xf32> to vector<8x32xf32>
      %152 = arith.mulf %150, %151 : vector<8x32xf32>
      %153 = vector.broadcast %132 : vector<1x32xf32> to vector<8x32xf32>
      %154 = arith.addf %152, %153 : vector<8x32xf32>
      %c0_80 = arith.constant 0 : index
      %c0_81 = arith.constant 0 : index
      %155 = vector.load %arg21[%c0_80, %c0_81] : memref<8x32xf32, #tpu.memory_space<vmem>>, vector<8x32xf32>
      tpu.vector_store %arg21[%c0_80, %c0_81], %154 {strides = array<i32>} : memref<8x32xf32, #tpu.memory_space<vmem>>, vector<8x32xf32>,
      %c0_82 = arith.constant 0 : index
      %c0_83 = arith.constant 0 : index
      %156 = vector.load %arg7[%c0_82, %c0_83] : memref<32x64xf32, #tpu.memory_space<vmem>>, vector<32x64xf32>
      %cst_84 = arith.constant dense<0.000000e+00> : vector<8x64xf32>
      %157 = tpu.matmul %154, %156, %cst_84 {dimension_numbers = #tpu.dot_dimension_numbers<[1], [0], [0], [1], [0, 0, 1, 1], [], []>} : vector<8x32xf32>, vector<32x64xf32>, vector<8x64xf32> -> vector<8x64xf32>
      %158 = vector.extract_strided_slice %157 {offsets = [0, 0], sizes = [8, 32], strides = [1, 1]} : vector<8x64xf32> to vector<8x32xf32>
      %159 = vector.shape_cast %158 : vector<8x32xf32> to vector<8x4x8xf32>
      %160 = tpu.transpose %159, [1, 0, 2] : vector<8x4x8xf32> -> vector<4x8x8xf32>
      %c0_85 = arith.constant 0 : index
      %c0_86 = arith.constant 0 : index
      %c0_87 = arith.constant 0 : index
      %161 = vector.load %arg22[%c0_85, %c0_86, %c0_87] : memref<4x8x8xf32, #tpu.memory_space<vmem>>, vector<4x8x8xf32>
      tpu.vector_store %arg22[%c0_85, %c0_86, %c0_87], %160 {strides = array<i32>} : memref<4x8x8xf32, #tpu.memory_space<vmem>>, vector<4x8x8xf32>,
      %162 = vector.extract_strided_slice %157 {offsets = [0, 32], sizes = [8, 32], strides = [1, 1]} : vector<8x64xf32> to vector<8x32xf32>
      %163 = vector.shape_cast %162 : vector<8x32xf32> to vector<8x4x8xf32>
      %164 = tpu.transpose %163, [1, 0, 2] : vector<8x4x8xf32> -> vector<4x8x8xf32>
      %c0_88 = arith.constant 0 : index
      %c0_89 = arith.constant 0 : index
      %c0_90 = arith.constant 0 : index
      %165 = vector.load %arg23[%c0_88, %c0_89, %c0_90] : memref<4x8x8xf32, #tpu.memory_space<vmem>>, vector<4x8x8xf32>
      tpu.vector_store %arg23[%c0_88, %c0_89, %c0_90], %164 {strides = array<i32>} : memref<4x8x8xf32, #tpu.memory_space<vmem>>, vector<4x8x8xf32>,
      %c0_91 = arith.constant 0 : index
      %c0_92 = arith.constant 0 : index
      %c0_93 = arith.constant 0 : index
      %166 = vector.load %arg3[%c0_91, %c0_92, %c0_93] : memref<1x8x32xf32, #tpu.memory_space<vmem>>, vector<1x8x32xf32>
      %167 = vector.shape_cast %166 : vector<1x8x32xf32> to vector<8x32xf32>
      %c0_94 = arith.constant 0 : index
      %c0_95 = arith.constant 0 : index
      %168 = vector.load %arg12[%c0_94, %c0_95] : memref<32x64xf32, #tpu.memory_space<vmem>>, vector<32x64xf32>
      %cst_96 = arith.constant dense<0.000000e+00> : vector<8x64xf32>
      %169 = tpu.matmul %167, %168, %cst_96 {dimension_numbers = #tpu.dot_dimension_numbers<[1], [0], [0], [1], [0, 0, 1, 1], [], []>} : vector<8x32xf32>, vector<32x64xf32>, vector<8x64xf32> -> vector<8x64xf32>
      %170 = vector.extract_strided_slice %169 {offsets = [0, 0], sizes = [8, 32], strides = [1, 1]} : vector<8x64xf32> to vector<8x32xf32>
      %171 = vector.shape_cast %170 : vector<8x32xf32> to vector<8x4x8xf32>
      %172 = tpu.transpose %171, [1, 0, 2] : vector<8x4x8xf32> -> vector<4x8x8xf32>
      %c0_97 = arith.constant 0 : index
      %c0_98 = arith.constant 0 : index
      %c0_99 = arith.constant 0 : index
      %173 = vector.load %arg24[%c0_97, %c0_98, %c0_99] : memref<4x8x8xf32, #tpu.memory_space<vmem>>, vector<4x8x8xf32>
      tpu.vector_store %arg24[%c0_97, %c0_98, %c0_99], %172 {strides = array<i32>} : memref<4x8x8xf32, #tpu.memory_space<vmem>>, vector<4x8x8xf32>,
      %174 = vector.extract_strided_slice %169 {offsets = [0, 32], sizes = [8, 32], strides = [1, 1]} : vector<8x64xf32> to vector<8x32xf32>
      %175 = vector.shape_cast %174 : vector<8x32xf32> to vector<8x4x8xf32>
      %176 = tpu.transpose %175, [1, 0, 2] : vector<8x4x8xf32> -> vector<4x8x8xf32>
      %c0_100 = arith.constant 0 : index
      %c0_101 = arith.constant 0 : index
      %c0_102 = arith.constant 0 : index
      %177 = vector.load %arg25[%c0_100, %c0_101, %c0_102] : memref<4x8x8xf32, #tpu.memory_space<vmem>>, vector<4x8x8xf32>
      tpu.vector_store %arg25[%c0_100, %c0_101, %c0_102], %176 {strides = array<i32>} : memref<4x8x8xf32, #tpu.memory_space<vmem>>, vector<4x8x8xf32>,
    } else {
    }
    %c0 = arith.constant 0 : index
    %5 = arith.index_cast %1 : i32 to index
    %c0_1 = arith.constant 0 : index
    %6 = vector.load %arg2[%c0, %5, %c0_1] : memref<1x8x32xf32, #tpu.memory_space<vmem>>, vector<1x8x32xf32>
    %7 = vector.shape_cast %6 : vector<1x8x32xf32> to vector<8x32xf32>
    %8 = tpu.iota {dimensions = array<i32: 0>} : vector<8x8xi32>
    %9 = vector.broadcast %1 : i32 to vector<8x8xi32>
    %10 = arith.addi %9, %8 : vector<8x8xi32>
    %11 = tpu.iota {dimensions = array<i32: 1>} : vector<8x8xi32>
    %12 = arith.cmpi sgt, %11, %10 : vector<8x8xi32>
    %cst = arith.constant -1.000000e+30 : f32
    %cst_2 = arith.constant 0.000000e+00 : f32
    %13 = vector.broadcast %cst : f32 to vector<8x8xf32>
    %14 = vector.broadcast %cst_2 : f32 to vector<8x8xf32>
    %15 = arith.select %12, %13, %14 : vector<8x8xi1>, vector<8x8xf32>
    %16 = arith.index_cast %1 : i32 to index
    %c0_3 = arith.constant 0 : index
    %17 = vector.load %arg21[%16, %c0_3] : memref<8x32xf32, #tpu.memory_space<vmem>>, vector<8x32xf32>
    %c0_4 = arith.constant 0 : index
    %c0_5 = arith.constant 0 : index
    %18 = vector.load %arg6[%c0_4, %c0_5] : memref<32x32xf32, #tpu.memory_space<vmem>>, vector<32x32xf32>
    %cst_6 = arith.constant dense<0.000000e+00> : vector<8x32xf32>
    %19 = tpu.matmul %17, %18, %cst_6 {dimension_numbers = #tpu.dot_dimension_numbers<[1], [0], [0], [1], [0, 0, 1, 1], [], []>} : vector<8x32xf32>, vector<32x32xf32>, vector<8x32xf32> -> vector<8x32xf32>
    %20 = vector.shape_cast %19 : vector<8x32xf32> to vector<8x4x8xf32>
    %21 = tpu.transpose %20, [1, 0, 2] : vector<8x4x8xf32> -> vector<4x8x8xf32>
    %c0_7 = arith.constant 0 : index
    %c0_8 = arith.constant 0 : index
    %c0_9 = arith.constant 0 : index
    %22 = vector.load %arg22[%c0_7, %c0_8, %c0_9] : memref<4x8x8xf32, #tpu.memory_space<vmem>>, vector<4x8x8xf32>
    %c0_10 = arith.constant 0 : index
    %c0_11 = arith.constant 0 : index
    %c0_12 = arith.constant 0 : index
    %23 = vector.load %arg23[%c0_10, %c0_11, %c0_12] : memref<4x8x8xf32, #tpu.memory_space<vmem>>, vector<4x8x8xf32>
    %c0_13 = arith.constant 0 : index
    %c0_14 = arith.constant 0 : index
    %24 = vector.load %arg8[%c0_13, %c0_14] : memref<32x32xf32, #tpu.memory_space<vmem>>, vector<32x32xf32>
    "tpu.trace_start"() <{level = 10 : i32, message = "htk,hsk->hts"}> : () -> ()
    %cst_15 = arith.constant dense<0.000000e+00> : vector<4x8x8xf32>
    %25 = tpu.matmul %21, %22, %cst_15 {dimension_numbers = #tpu.dot_dimension_numbers<[2], [2], [1], [1], [0, 0, 0, 1, 1, 1], [0], [0]>} : vector<4x8x8xf32>, vector<4x8x8xf32>, vector<4x8x8xf32> -> vector<4x8x8xf32>
    "tpu.trace_stop"() : () -> ()
    %26 = vector.shape_cast %15 : vector<8x8xf32> to vector<1x8x8xf32>
    %27 = vector.broadcast %26 : vector<1x8x8xf32> to vector<4x8x8xf32>
    %28 = arith.addf %25, %27 : vector<4x8x8xf32>
    %cst_16 = arith.constant dense<0xFF800000> : vector<4x8xf32>
    %29 = vector.multi_reduction <maximumf>, %28, %cst_16 [2] : vector<4x8x8xf32> to vector<4x8xf32>
    %30 = vector.shape_cast %29 : vector<4x8xf32> to vector<4x8x1xf32>
    %31 = vector.broadcast %30 : vector<4x8x1xf32> to vector<4x8x8xf32>
    %32 = arith.subf %28, %31 : vector<4x8x8xf32>
    %33 = math.exp %32 : vector<4x8x8xf32>
    %cst_17 = arith.constant dense<0.000000e+00> : vector<4x8xf32>
    %34 = vector.multi_reduction <add>, %33, %cst_17 [2] : vector<4x8x8xf32> to vector<4x8xf32>
    %35 = vector.shape_cast %34 : vector<4x8xf32> to vector<4x8x1xf32>
    %36 = vector.broadcast %35 : vector<4x8x1xf32> to vector<4x8x8xf32>
    %37 = arith.divf %33, %36 : vector<4x8x8xf32>
    "tpu.trace_start"() <{level = 10 : i32, message = "hts,hsk->htk"}> : () -> ()
    %cst_18 = arith.constant dense<0.000000e+00> : vector<4x8x8xf32>
    %38 = tpu.matmul %37, %23, %cst_18 {dimension_numbers = #tpu.dot_dimension_numbers<[2], [1], [1], [2], [0, 0, 0, 1, 1, 2], [0], [0]>} : vector<4x8x8xf32>, vector<4x8x8xf32>, vector<4x8x8xf32> -> vector<4x8x8xf32>
    "tpu.trace_stop"() : () -> ()
    %39 = tpu.transpose %38, [1, 0, 2] : vector<4x8x8xf32> -> vector<8x4x8xf32>
    %40 = vector.shape_cast %39 : vector<8x4x8xf32> to vector<8x32xf32>
    %cst_19 = arith.constant dense<0.000000e+00> : vector<8x32xf32>
    %41 = tpu.matmul %40, %24, %cst_19 {dimension_numbers = #tpu.dot_dimension_numbers<[1], [0], [0], [1], [0, 0, 1, 1], [], []>} : vector<8x32xf32>, vector<32x32xf32>, vector<8x32xf32> -> vector<8x32xf32>
    %42 = arith.addf %7, %41 : vector<8x32xf32>
    %c0_20 = arith.constant 0 : index
    %c0_21 = arith.constant 0 : index
    %43 = vector.load %arg9[%c0_20, %c0_21] : memref<1x32xf32, #tpu.memory_space<vmem>>, vector<1x32xf32>
    %c0_22 = arith.constant 0 : index
    %c0_23 = arith.constant 0 : index
    %44 = vector.load %arg10[%c0_22, %c0_23] : memref<1x32xf32, #tpu.memory_space<vmem>>, vector<1x32xf32>
    %cst_24 = arith.constant dense<0.000000e+00> : vector<8xf32>
    %45 = vector.multi_reduction <add>, %42, %cst_24 [1] : vector<8x32xf32> to vector<8xf32>
    %46 = vector.shape_cast %45 : vector<8xf32> to vector<8x1xf32>
    %cst_25 = arith.constant 3.200000e+01 : f32
    %47 = vector.broadcast %cst_25 : f32 to vector<8x1xf32>
    %48 = arith.divf %46, %47 : vector<8x1xf32>
    %49 = vector.broadcast %48 : vector<8x1xf32> to vector<8x32xf32>
    %50 = arith.subf %42, %49 : vector<8x32xf32>
    %51 = arith.mulf %50, %50 : vector<8x32xf32>
    %cst_26 = arith.constant dense<0.000000e+00> : vector<8xf32>
    %52 = vector.multi_reduction <add>, %51, %cst_26 [1] : vector<8x32xf32> to vector<8xf32>
    %53 = vector.shape_cast %52 : vector<8xf32> to vector<8x1xf32>
    %cst_27 = arith.constant 3.200000e+01 : f32
    %54 = vector.broadcast %cst_27 : f32 to vector<8x1xf32>
    %55 = arith.divf %53, %54 : vector<8x1xf32>
    %56 = vector.broadcast %48 : vector<8x1xf32> to vector<8x32xf32>
    %57 = arith.subf %42, %56 : vector<8x32xf32>
    %cst_28 = arith.constant 9.99999974E-6 : f32
    %58 = vector.broadcast %cst_28 : f32 to vector<8x1xf32>
    %59 = arith.addf %55, %58 : vector<8x1xf32>
    %60 = math.rsqrt %59 : vector<8x1xf32>
    %61 = vector.broadcast %60 : vector<8x1xf32> to vector<8x32xf32>
    %62 = arith.mulf %57, %61 : vector<8x32xf32>
    %63 = vector.broadcast %43 : vector<1x32xf32> to vector<8x32xf32>
    %64 = arith.mulf %62, %63 : vector<8x32xf32>
    %65 = vector.broadcast %44 : vector<1x32xf32> to vector<8x32xf32>
    %66 = arith.addf %64, %65 : vector<8x32xf32>
    %c0_29 = arith.constant 0 : index
    %c0_30 = arith.constant 0 : index
    %67 = vector.load %arg11[%c0_29, %c0_30] : memref<32x32xf32, #tpu.memory_space<vmem>>, vector<32x32xf32>
    %cst_31 = arith.constant dense<0.000000e+00> : vector<8x32xf32>
    %68 = tpu.matmul %66, %67, %cst_31 {dimension_numbers = #tpu.dot_dimension_numbers<[1], [0], [0], [1], [0, 0, 1, 1], [], []>} : vector<8x32xf32>, vector<32x32xf32>, vector<8x32xf32> -> vector<8x32xf32>
    %69 = vector.shape_cast %68 : vector<8x32xf32> to vector<8x4x8xf32>
    %70 = tpu.transpose %69, [1, 0, 2] : vector<8x4x8xf32> -> vector<4x8x8xf32>
    %c0_32 = arith.constant 0 : index
    %c0_33 = arith.constant 0 : index
    %c0_34 = arith.constant 0 : index
    %71 = vector.load %arg24[%c0_32, %c0_33, %c0_34] : memref<4x8x8xf32, #tpu.memory_space<vmem>>, vector<4x8x8xf32>
    %c0_35 = arith.constant 0 : index
    %c0_36 = arith.constant 0 : index
    %c0_37 = arith.constant 0 : index
    %72 = vector.load %arg25[%c0_35, %c0_36, %c0_37] : memref<4x8x8xf32, #tpu.memory_space<vmem>>, vector<4x8x8xf32>
    %c0_38 = arith.constant 0 : index
    %c0_39 = arith.constant 0 : index
    %73 = vector.load %arg13[%c0_38, %c0_39] : memref<32x32xf32, #tpu.memory_space<vmem>>, vector<32x32xf32>
    "tpu.trace_start"() <{level = 10 : i32, message = "htk,hsk->hts"}> : () -> ()
    %cst_40 = arith.constant dense<0.000000e+00> : vector<4x8x8xf32>
    %74 = tpu.matmul %70, %71, %cst_40 {dimension_numbers = #tpu.dot_dimension_numbers<[2], [2], [1], [1], [0, 0, 0, 1, 1, 1], [0], [0]>} : vector<4x8x8xf32>, vector<4x8x8xf32>, vector<4x8x8xf32> -> vector<4x8x8xf32>
    "tpu.trace_stop"() : () -> ()
    %cst_41 = arith.constant dense<0xFF800000> : vector<4x8xf32>
    %75 = vector.multi_reduction <maximumf>, %74, %cst_41 [2] : vector<4x8x8xf32> to vector<4x8xf32>
    %76 = vector.shape_cast %75 : vector<4x8xf32> to vector<4x8x1xf32>
    %77 = vector.broadcast %76 : vector<4x8x1xf32> to vector<4x8x8xf32>
    %78 = arith.subf %74, %77 : vector<4x8x8xf32>
    %79 = math.exp %78 : vector<4x8x8xf32>
    %cst_42 = arith.constant dense<0.000000e+00> : vector<4x8xf32>
    %80 = vector.multi_reduction <add>, %79, %cst_42 [2] : vector<4x8x8xf32> to vector<4x8xf32>
    %81 = vector.shape_cast %80 : vector<4x8xf32> to vector<4x8x1xf32>
    %82 = vector.broadcast %81 : vector<4x8x1xf32> to vector<4x8x8xf32>
    %83 = arith.divf %79, %82 : vector<4x8x8xf32>
    "tpu.trace_start"() <{level = 10 : i32, message = "hts,hsk->htk"}> : () -> ()
    %cst_43 = arith.constant dense<0.000000e+00> : vector<4x8x8xf32>
    %84 = tpu.matmul %83, %72, %cst_43 {dimension_numbers = #tpu.dot_dimension_numbers<[2], [1], [1], [2], [0, 0, 0, 1, 1, 2], [0], [0]>} : vector<4x8x8xf32>, vector<4x8x8xf32>, vector<4x8x8xf32> -> vector<4x8x8xf32>
    "tpu.trace_stop"() : () -> ()
    %85 = tpu.transpose %84, [1, 0, 2] : vector<4x8x8xf32> -> vector<8x4x8xf32>
    %86 = vector.shape_cast %85 : vector<8x4x8xf32> to vector<8x32xf32>
    %cst_44 = arith.constant dense<0.000000e+00> : vector<8x32xf32>
    %87 = tpu.matmul %86, %73, %cst_44 {dimension_numbers = #tpu.dot_dimension_numbers<[1], [0], [0], [1], [0, 0, 1, 1], [], []>} : vector<8x32xf32>, vector<32x32xf32>, vector<8x32xf32> -> vector<8x32xf32>
    %88 = arith.addf %42, %87 : vector<8x32xf32>
    %c0_45 = arith.constant 0 : index
    %c0_46 = arith.constant 0 : index
    %89 = vector.load %arg14[%c0_45, %c0_46] : memref<1x32xf32, #tpu.memory_space<vmem>>, vector<1x32xf32>
    %c0_47 = arith.constant 0 : index
    %c0_48 = arith.constant 0 : index
    %90 = vector.load %arg15[%c0_47, %c0_48] : memref<1x32xf32, #tpu.memory_space<vmem>>, vector<1x32xf32>
    %cst_49 = arith.constant dense<0.000000e+00> : vector<8xf32>
    %91 = vector.multi_reduction <add>, %88, %cst_49 [1] : vector<8x32xf32> to vector<8xf32>
    %92 = vector.shape_cast %91 : vector<8xf32> to vector<8x1xf32>
    %cst_50 = arith.constant 3.200000e+01 : f32
    %93 = vector.broadcast %cst_50 : f32 to vector<8x1xf32>
    %94 = arith.divf %92, %93 : vector<8x1xf32>
    %95 = vector.broadcast %94 : vector<8x1xf32> to vector<8x32xf32>
    %96 = arith.subf %88, %95 : vector<8x32xf32>
    %97 = arith.mulf %96, %96 : vector<8x32xf32>
    %cst_51 = arith.constant dense<0.000000e+00> : vector<8xf32>
    %98 = vector.multi_reduction <add>, %97, %cst_51 [1] : vector<8x32xf32> to vector<8xf32>
    %99 = vector.shape_cast %98 : vector<8xf32> to vector<8x1xf32>
    %cst_52 = arith.constant 3.200000e+01 : f32
    %100 = vector.broadcast %cst_52 : f32 to vector<8x1xf32>
    %101 = arith.divf %99, %100 : vector<8x1xf32>
    %102 = vector.broadcast %94 : vector<8x1xf32> to vector<8x32xf32>
    %103 = arith.subf %88, %102 : vector<8x32xf32>
    %cst_53 = arith.constant 9.99999974E-6 : f32
    %104 = vector.broadcast %cst_53 : f32 to vector<8x1xf32>
    %105 = arith.addf %101, %104 : vector<8x1xf32>
    %106 = math.rsqrt %105 : vector<8x1xf32>
    %107 = vector.broadcast %106 : vector<8x1xf32> to vector<8x32xf32>
    %108 = arith.mulf %103, %107 : vector<8x32xf32>
    %109 = vector.broadcast %89 : vector<1x32xf32> to vector<8x32xf32>
    %110 = arith.mulf %108, %109 : vector<8x32xf32>
    %111 = vector.broadcast %90 : vector<1x32xf32> to vector<8x32xf32>
    %112 = arith.addf %110, %111 : vector<8x32xf32>
    %c0_54 = arith.constant 0 : index
    %c0_55 = arith.constant 0 : index
    %113 = vector.load %arg16[%c0_54, %c0_55] : memref<32x128xf32, #tpu.memory_space<vmem>>, vector<32x128xf32>
    %cst_56 = arith.constant dense<0.000000e+00> : vector<8x128xf32>
    %114 = tpu.matmul %112, %113, %cst_56 {dimension_numbers = #tpu.dot_dimension_numbers<[1], [0], [0], [1], [0, 0, 1, 1], [], []>} : vector<8x32xf32>, vector<32x128xf32>, vector<8x128xf32> -> vector<8x128xf32>
    %c0_57 = arith.constant 0 : index
    %c0_58 = arith.constant 0 : index
    %115 = vector.load %arg17[%c0_57, %c0_58] : memref<1x128xf32, #tpu.memory_space<vmem>>, vector<1x128xf32>
    %116 = vector.broadcast %115 : vector<1x128xf32> to vector<8x128xf32>
    %117 = arith.addf %114, %116 : vector<8x128xf32>
    %cst_59 = arith.constant 0.000000e+00 : f32
    %118 = vector.broadcast %cst_59 : f32 to vector<8x128xf32>
    %119 = arith.maximumf %117, %118 : vector<8x128xf32>
    %c0_60 = arith.constant 0 : index
    %c0_61 = arith.constant 0 : index
    %120 = vector.load %arg18[%c0_60, %c0_61] : memref<128x32xf32, #tpu.memory_space<vmem>>, vector<128x32xf32>
    %cst_62 = arith.constant dense<0.000000e+00> : vector<8x32xf32>
    %121 = tpu.matmul %119, %120, %cst_62 {dimension_numbers = #tpu.dot_dimension_numbers<[1], [0], [0], [1], [0, 0, 1, 1], [], []>} : vector<8x128xf32>, vector<128x32xf32>, vector<8x32xf32> -> vector<8x32xf32>
    %c0_63 = arith.constant 0 : index
    %c0_64 = arith.constant 0 : index
    %122 = vector.load %arg19[%c0_63, %c0_64] : memref<1x32xf32, #tpu.memory_space<vmem>>, vector<1x32xf32>
    %123 = vector.broadcast %122 : vector<1x32xf32> to vector<8x32xf32>
    %124 = arith.addf %121, %123 : vector<8x32xf32>
    %125 = arith.addf %88, %124 : vector<8x32xf32>
    %c0_65 = arith.constant 0 : index
    %c0_66 = arith.constant 0 : index
    %c0_67 = arith.constant 0 : index
    %126 = vector.load %arg20[%c0_65, %c0_66, %c0_67] : memref<1x8x32xf32, #tpu.memory_space<vmem>>, vector<1x8x32xf32>
    %127 = vector.shape_cast %126 : vector<1x8x32xf32> to vector<8x32xf32>
    %128 = vector.shape_cast %125 : vector<8x32xf32> to vector<1x8x32xf32>
    tpu.vector_store %arg20[%c0_65, %c0_66, %c0_67], %128 {strides = array<i32>} : memref<1x8x32xf32, #tpu.memory_space<vmem>>, vector<1x8x32xf32>,
    return
  }
  func.func @transform_0(%arg0: i32, %arg1: i32) -> (i32, i32, i32) {
    %c0_i32 = arith.constant 0 : i32
    %c0_i32_0 = arith.constant 0 : i32
    %c0_i32_1 = arith.constant 0 : i32
    return %arg0, %c0_i32, %c0_i32_0 : i32, i32, i32
  }
  func.func @transform_1(%arg0: i32, %arg1: i32) -> (i32, i32, i32) {
    %c0_i32 = arith.constant 0 : i32
    %c0_i32_0 = arith.constant 0 : i32
    %c0_i32_1 = arith.constant 0 : i32
    return %arg0, %c0_i32, %c0_i32_0 : i32, i32, i32
  }
  func.func @transform_2(%arg0: i32, %arg1: i32) -> (i32, i32) {
    %c0_i32 = arith.constant 0 : i32
    %c0_i32_0 = arith.constant 0 : i32
    %c0_i32_1 = arith.constant 0 : i32
    return %c0_i32, %c0_i32_0 : i32, i32
  }
  func.func @transform_3(%arg0: i32, %arg1: i32) -> (i32, i32) {
    %c0_i32 = arith.constant 0 : i32
    %c0_i32_0 = arith.constant 0 : i32
    %c0_i32_1 = arith.constant 0 : i32
    return %c0_i32, %c0_i32_0 : i32, i32
  }
  func.func @transform_4(%arg0: i32, %arg1: i32) -> (i32, i32) {
    %c0_i32 = arith.constant 0 : i32
    %c0_i32_0 = arith.constant 0 : i32
    %c0_i32_1 = arith.constant 0 : i32
    return %c0_i32, %c0_i32_0 : i32, i32
  }
  func.func @transform_5(%arg0: i32, %arg1: i32) -> (i32, i32) {
    %c0_i32 = arith.constant 0 : i32
    %c0_i32_0 = arith.constant 0 : i32
    %c0_i32_1 = arith.constant 0 : i32
    return %c0_i32, %c0_i32_0 : i32, i32
  }
  func.func @transform_6(%arg0: i32, %arg1: i32) -> (i32, i32) {
    %c0_i32 = arith.constant 0 : i32
    %c0_i32_0 = arith.constant 0 : i32
    %c0_i32_1 = arith.constant 0 : i32
    return %c0_i32, %c0_i32_0 : i32, i32
  }
  func.func @transform_7(%arg0: i32, %arg1: i32) -> (i32, i32) {
    %c0_i32 = arith.constant 0 : i32
    %c0_i32_0 = arith.constant 0 : i32
    %c0_i32_1 = arith.constant 0 : i32
    return %c0_i32, %c0_i32_0 : i32, i32
  }
  func.func @transform_8(%arg0: i32, %arg1: i32) -> (i32, i32) {
    %c0_i32 = arith.constant 0 : i32
    %c0_i32_0 = arith.constant 0 : i32
    %c0_i32_1 = arith.constant 0 : i32
    return %c0_i32, %c0_i32_0 : i32, i32
  }
  func.func @transform_9(%arg0: i32, %arg1: i32) -> (i32, i32) {
    %c0_i32 = arith.constant 0 : i32
    %c0_i32_0 = arith.constant 0 : i32
    %c0_i32_1 = arith.constant 0 : i32
    return %c0_i32, %c0_i32_0 : i32, i32
  }
  func.func @transform_10(%arg0: i32, %arg1: i32) -> (i32, i32) {
    %c0_i32 = arith.constant 0 : i32
    %c0_i32_0 = arith.constant 0 : i32
    %c0_i32_1 = arith.constant 0 : i32
    return %c0_i32, %c0_i32_0 : i32, i32
  }
  func.func @transform_11(%arg0: i32, %arg1: i32) -> (i32, i32) {
    %c0_i32 = arith.constant 0 : i32
    %c0_i32_0 = arith.constant 0 : i32
    %c0_i32_1 = arith.constant 0 : i32
    return %c0_i32, %c0_i32_0 : i32, i32
  }
  func.func @transform_12(%arg0: i32, %arg1: i32) -> (i32, i32) {
    %c0_i32 = arith.constant 0 : i32
    %c0_i32_0 = arith.constant 0 : i32
    %c0_i32_1 = arith.constant 0 : i32
    return %c0_i32, %c0_i32_0 : i32, i32
  }
  func.func @transform_13(%arg0: i32, %arg1: i32) -> (i32, i32) {
    %c0_i32 = arith.constant 0 : i32
    %c0_i32_0 = arith.constant 0 : i32
    %c0_i32_1 = arith.constant 0 : i32
    return %c0_i32, %c0_i32_0 : i32, i32
  }
  func.func @transform_14(%arg0: i32, %arg1: i32) -> (i32, i32) {
    %c0_i32 = arith.constant 0 : i32
    %c0_i32_0 = arith.constant 0 : i32
    %c0_i32_1 = arith.constant 0 : i32
    return %c0_i32, %c0_i32_0 : i32, i32
  }
  func.func @transform_15(%arg0: i32, %arg1: i32) -> (i32, i32) {
    %c0_i32 = arith.constant 0 : i32
    %c0_i32_0 = arith.constant 0 : i32
    %c0_i32_1 = arith.constant 0 : i32
    return %c0_i32, %c0_i32_0 : i32, i32
  }
  func.func @transform_16(%arg0: i32, %arg1: i32) -> (i32, i32) {
    %c0_i32 = arith.constant 0 : i32
    %c0_i32_0 = arith.constant 0 : i32
    %c0_i32_1 = arith.constant 0 : i32
    return %c0_i32, %c0_i32_0 : i32, i32
  }
  func.func @transform_17(%arg0: i32, %arg1: i32) -> (i32, i32) {
    %c0_i32 = arith.constant 0 : i32
    %c0_i32_0 = arith.constant 0 : i32
    %c0_i32_1 = arith.constant 0 : i32
    return %c0_i32, %c0_i32_0 : i32, i32
  }
  func.func @transform_18(%arg0: i32, %arg1: i32) -> (i32, i32, i32) {
    %c0_i32 = arith.constant 0 : i32
    %c0_i32_0 = arith.constant 0 : i32
    return %arg0, %arg1, %c0_i32 : i32, i32, i32
  }
}

</mosaic_0001>

<bundles_post_ra>
// kernel: tpu_custom_call.1
= control target key start
LH: loop header
LB: loop body
LE: loop exit
PB: predicated region body
PF: predicated region fallthrough
CT: control target
= control target key end

     0   :  { %s5787_s0 = inlined_call_operand.hbm [shape: f32[2,8,32], index: 0, kind: input, shape index: {}]   ;;  %s5788_s1 = inlined_call_operand.hbm [shape: f32[2,8,32], index: 1, kind: input, shape index: {}]   ;;  %s5789_s2 = inlined_call_operand.vmem [shape: f32[1,32], index: 2, kind: input, shape index: {}]   ;;  %s5790_s3 = inlined_call_operand.vmem [shape: f32[1,32], index: 3, kind: input, shape index: {}]   ;;  %s5791_s4 = inlined_call_operand.vmem [shape: f32[32,32], index: 4, kind: input, shape index: {}]   ;;  %s5792_s5 = inlined_call_operand.vmem [shape: f32[32,64], index: 5, kind: input, shape index: {}]   ;;  %s5793_s6 = inlined_call_operand.vmem [shape: f32[32,32], index: 6, kind: input, shape index: {}]   ;;  %s5794_s7 = inlined_call_operand.vmem [shape: f32[1,32], index: 7, kind: input, shape index: {}]   ;;  %s5795_s8 = inlined_call_operand.vmem [shape: f32[1,32], index: 8, kind: input, shape index: {}]   ;;  %s5796_s9 = inlined_call_operand.vmem [shape: f32[32,32], index: 9, kind: input, shape index: {}]   ;;  %s5797_s10 = inlined_call_operand.vmem [shape: f32[32,64], index: 10, kind: input, shape index: {}]   ;;  %s5798_s11 = inlined_call_operand.hbm [shape: f32[32,32], index: 11, kind: input, shape index: {}]   ;;  %s5799_s12 = inlined_call_operand.vmem [shape: f32[1,32], index: 12, kind: input, shape index: {}]   ;;  %s5800_s13 = inlined_call_operand.vmem [shape: f32[1,32], index: 13, kind: input, shape index: {}]   ;;  %s5801_s14 = inlined_call_operand.hbm [shape: f32[32,128], index: 14, kind: input, shape index: {}]   ;;  %s5802_s15 = inlined_call_operand.vmem [shape: f32[1,128], index: 15, kind: input, shape index: {}]   ;;  %s5803_s16 = inlined_call_operand.vmem [shape: f32[128,32], index: 16, kind: input, shape index: {}]   ;;  %s5804_s17 = inlined_call_operand.vmem [shape: f32[1,32], index: 17, kind: input, shape index: {}]   ;;  %s5805_s18 = inlined_call_operand.hbm [shape: f32[2,8,32], index: 18, kind: output, shape index: {}]  }
   0x1   :  { %5821 = sst [smem:[#allocation29_spill]] %s5787_s0 }
   0x2   :  { %5822 = sst [smem:[#allocation30_spill]] %s5788_s1 }
   0x3   :  { %5823 = sst [smem:[#allocation31_spill]] %s5789_s2 }
   0x4   :  { %5824 = sst [smem:[#allocation32_spill]] %s5798_s11 }
   0x5   :  { %5825 = sst [smem:[#allocation33_spill]] %s5799_s12 }
   0x6   :  { %5826 = sst [smem:[#allocation34_spill]] %s5800_s13 }
   0x7   :  { %5827 = sst [smem:[#allocation35_spill]] %s5801_s14 }
   0x8   :  { %5828 = sst [smem:[#allocation36_spill]] %s5802_s15 }
   0x9   :  { %5829 = sst [smem:[#allocation37_spill]] %s5803_s16 }
   0xa   :  { %5830 = sst [smem:[#allocation38_spill]] %s5804_s17 }
   0xb   :  { %5831 = sst [smem:[#allocation39_spill]] %s5805_s18 }
   0xc   :  { %23 = vsyncpa [#allocation8], 0 }
   0xd   :  { %25 = vsyncpa [#allocation8 + $0x1], 0 }
   0xe   :  { %26 = vsyncpa [#allocation11], 0 }
   0xf   :  { %28 = vsyncpa [#allocation11 + $0x1], 0 }
  0x10   :  { %29 = vsyncpa [#allocation14], 0 }
  0x11   :  { %30 = vsyncpa [#allocation9], 0 }
  0x12   :  { %32 = vsyncpa [#allocation9 + $0x1], 0  ;;  %s4947_s27 = smov 0   ;;  %s4949_s28 = smov 0  }
  0x13   :  { %s4951_s29 = smov 0   ;;  %s4953_s30 = smov 0  }
  0x14   :  { %s4955_s0 = smov 0   ;;  %s4957_s19 = smov 0  }
  0x15 LB: > { %5832 = sst [smem:[#allocation21_spill]] %s4811_s27  ;;  %s4978_s1 = sadd.s32 4294967295, %s4831_s19   ;;  %s4831_s19 = sphi %s4957_s19, %s38_s19   ;;  %s4827_s0 = sphi %s4955_s0, %s5875_s0   ;;  %s4823_s30 = sphi %s4953_s30, %s5874_s30   ;;  %s4819_s29 = sphi %s4951_s29, %s5873_s29   ;;  %s4815_s28 = sphi %s4949_s28, %s5877_s28   ;;  %s4811_s27 = sphi %s4947_s27, %s5876_s27  }
  0x16   : > { %5833 = sst [smem:[#allocation22_spill]] %s4819_s29  ;;  %s4065_s20 = sadd.s32 4294967294, %s4831_s19  }
  0x17   : > { %5834 = sst [smem:[#allocation23_spill]] %s4823_s30  ;;  %p70_p0 = scmp.ne.s32.totalorder %s4815_s28, %s4811_s27 }
  0x18   : > { %5835 = sst [smem:[#allocation24_spill]] %s4827_s0  ;;  %p5811_p1 = scmp.eq.s32.totalorder %s4978_s1, 0 }
  0x19   : > { %p464_p3 = scmp.eq.s32.totalorder %s4065_s20, 1  ;;  %p4066_p5 = scmp.ge.s32.totalorder %s4831_s19, 1 }
  0x1a   : > { %p4987_p4 = por %p5811_p1, %p70_p0  ;;  %p471_p7 = scmp.lt.s32.totalorder %s4831_s19, 3 }
  0x1b   : > { %p4992_p6 = por %p464_p3, %p70_p0  ;;  %s4833_s23 = smov [#allocation12]  }
  0x1c   : > { %s5836_s21 = scalar_select %p4987_p4, 1, 0 }
  0x1d   : > { %s5837_s22 = scalar_select %p4992_p6, 1, 0 }
  0x1e   : > { %p4997_p8 = pnand %p4066_p5, %p471_p7  ;;  %s510_s24 = sshll.u32 %s4833_s23, 4  ;;  %s5001_s24 = int_to_ptr.vmem [resolvable:$true] %s510_s24 }
  0x1f   : > { %5838 = sst [smem:[#allocation25_spill]] %s5837_s22  ;;  %s4834_s26 = smov [#allocation13]  }
  0x20   : > { %s5839_s2 = scalar_select %p4997_p8, 1, 0 }
  0x21   : > { %p4495_p9 = pneg %p4997_p8  ;;  %s529_s20 = sshll.u32 %s4834_s26, 4  ;;  %s5012_s20 = int_to_ptr.vmem [resolvable:$true] %s529_s20 }
  0x22   : > { %s5841_s11 = sld [smem:[#allocation32_spill]] }
  0x23   : > { %p5008_p11 = pnand %p4495_p9, %p5811_p1 }
  0x25   : > { %p4623_p13 = pneg %p5008_p11 }
  0x28   : > { %s4621_s23 = scalar_lea.hbm %s5841_s11, 512 }
  0x29   : > { %p4622_p12 = scmp.ne.s32.totalorder %s5841_s11, %s4621_s23  ;;  %p4628_p5 = scmp.lt.u32.totalorder %s4621_s23, %s5841_s11 }
  0x2b   : > { %p4624_p0 = pnand %p4623_p13, %p4622_p12 }
  0x2d   : > { %p4625_p3 = pneg %p4624_p0 }
  0x2f   : > { %p4630_p7 = pnand %p4628_p5, %p4625_p3 }
  0x31   : > { %4633 = shalt.err (!%p4630_p7)
}
  0x32   : > { %s4634_s27 = scalar_lea.vmem %s5001_s24, 512  ;;  %p4642_p2 = scmp.lt.s32.totalorder %s5001_s24, %s5001_s24 }
  0x33   : > { %p4635_p9 = scmp.ne.s32.totalorder %s5001_s24, %s4634_s27  ;;  %p4643_p12 = scmp.lt.s32.totalorder %s4634_s27, %s4634_s27 }
  0x35   : > { %p4637_p10 = pnand %p4635_p9, %p4623_p13  ;;  %p4644_p0 = por %p4643_p12, %p4642_p2 }
  0x37   : > { %p4638_p1 = pneg %p4637_p10 }
  0x39   : > { %p4645_p6 = pnand %p4644_p0, %p4638_p1 }
  0x3b   : > { %4648 = shalt.err (!%p4645_p6)
}
  0x3c   : > { %s4835_s15 = smov 128   ;;  %s4836_s17 = smov 8  }
  0x3d   : > { %4498 = dma.hbm_to_vmem [thread:$0]  (!%p5008_p11), %s5841_s11, 512, %s5001_s24, [#allocation11], %s4835_s15, %s4835_s15, %s4836_s17  }
  0x3e   : > { %s5842_s14 = sld [smem:[#allocation35_spill]] }
  0x44   : > { %s4649_s23 = scalar_lea.hbm %s5842_s14, 512 }
  0x45   : > { %p4650_p2 = scmp.ne.s32.totalorder %s5842_s14, %s4649_s23  ;;  %p4656_p10 = scmp.lt.u32.totalorder %s4649_s23, %s5842_s14 }
  0x47   : > { %p4652_p1 = pnand %p4650_p2, %p4623_p13 }
  0x49   : > { %p4653_p6 = pneg %p4652_p1 }
  0x4b   : > { %p4658_p3 = pnand %p4656_p10, %p4653_p6 }
  0x4d   : > { %4661 = shalt.err (!%p4658_p3)
}
  0x4e   : > { %s4662_s24 = scalar_lea.vmem %s5012_s20, 512  ;;  %p4670_p12 = scmp.lt.s32.totalorder %s5012_s20, %s5012_s20 }
  0x4f   : > { %p4663_p5 = scmp.ne.s32.totalorder %s5012_s20, %s4662_s24  ;;  %p4671_p0 = scmp.lt.s32.totalorder %s4662_s24, %s4662_s24 }
  0x51   : > { %p4665_p7 = pnand %p4663_p5, %p4623_p13  ;;  %p4672_p2 = por %p4671_p0, %p4670_p12 }
  0x53   : > { %p4666_p9 = pneg %p4665_p7 }
  0x55   : > { %p4673_p1 = pnand %p4672_p2, %p4666_p9 }
  0x57   : > { %4676 = shalt.err (!%p4673_p1)
}
  0x58   : > { %4501 = dma.hbm_to_vmem [thread:$0]  (!%p5008_p11), %s5842_s14, 512, %s5012_s20, [#allocation14], %s4835_s15, %s4835_s15, %s4836_s17  }
  0x59   : > { %s50_s16 = sadd.s32 1, %s4827_s0  ;;  %s57_s18 = sadd.s32 1, %s4819_s29 }
  0x5a   : > { %p52_p13 = scmp.ge.s32.totalorder %s50_s16, 2  ;;  %p64_p6 = scmp.ne.s32.totalorder %s4819_s29, %s4815_s28 }
  0x5b   : > { %p65_p10 = scmp.eq.s32.totalorder %s4831_s19, 0  ;;  %p4515_p3 = scmp.lt.s32.totalorder %s4831_s19, 2 }
  0x5c   : > { %s5879_s16 = smov (%p52_p13, %s50_s16), 0  ;;  %p5844_p7 = scmp.eq.s32.totalorder %s4978_s1, 1 }
  0x5d   : > { %5843 = sst [smem:[#allocation26_spill]] %s5879_s16  ;;  %p66_p5 = por %p65_p10, %p64_p6 }
  0x5e   : > { %p5076_p9 = por %p5844_p7, %p64_p6  ;;  %s54_s30 = ssub.s32 %s4827_s0, %s5879_s16 }
  0x5f   : > { %s552_s22 = sand.u32 1, %s4819_s29   ;;  %p55_p12 = scmp.eq.s32.totalorder %s54_s30, 0 }
  0x60   : > { %s5845_s25 = scalar_select %p5076_p9, 1, 0 }
  0x61   : > { %s5083_s20 = sshll.u32 %s552_s22, 3  ;;  %s4071_s15 = sshll.u32 %s4827_s0, 7 }
  0x62   : > { %5846 = sst [smem:[#allocation27_spill]] %s5845_s25  ;;  %s5848_s27 = sld [smem:[#allocation29_spill]] }
  0x63   : > { %s5087_s17 = scalar_select %p55_p12, %s4819_s29, %s57_s18  }
  0x64   : > { %s556_s13 = scalar_lea.vmem [#allocation7], %s5083_s20  ;;  %p5097_p11 = pnand %p4515_p3, %p66_p5 }
  0x65   : > { %5847 = sst [smem:[#allocation28_spill]] %s5087_s17  ;;  %s563_s11 = sshll.u32 %s556_s13, 4  ;;  %s5101_s11 = int_to_ptr.vmem [resolvable:$true] %s563_s11 }
  0x66   : > { %s5851_s26 = sld [smem:[#allocation30_spill]]  ;;  %p4679_p2 = pneg %p5097_p11 }
  0x68   : > { %s5849_s24 = smov %s5848_s27  ;;  %s5092_s12 = scalar_lea.hbm %s5848_s27, %s4071_s15 }
  0x69   : > { %s553_s27 = scalar_lea.sflag [#allocation8], %s552_s22  ;;  %s4677_s16 = scalar_lea.hbm %s5092_s12, 128 }
  0x6a   : > { %p4678_p0 = scmp.ne.s32.totalorder %s5092_s12, %s4677_s16  ;;  %s4682_s17 = scalar_lea.hbm %s5849_s24, 256 }
  0x6b   : > { %p4683_p6 = scmp.lt.u32.totalorder %s5092_s12, %s5849_s24  ;;  %p4684_p10 = scmp.lt.u32.totalorder %s4682_s17, %s4677_s16 }
  0x6c   : > { %s5106_s23 = scalar_lea.hbm %s5851_s26, %s4071_s15  ;;  %p4680_p1 = pnand %p4679_p2, %p4678_p0 }
  0x6d   : > { %p4685_p3 = por %p4684_p10, %p4683_p6  ;;  %p4686_p5 = scmp.lt.u32.totalorder %s4677_s16, %s5092_s12 }
  0x6e   : > { %p4681_p13 = pneg %p4680_p1 }
  0x6f   : > { %p4687_p7 = por %p4686_p5, %p4685_p3 }
  0x71   : > { %p4688_p12 = pnand %p4687_p7, %p4681_p13 }
  0x73   : > { %4691 = shalt.err (!%p4688_p12)
}
  0x74   : > { %s4692_s14 = scalar_lea.vmem %s5101_s11, 128  ;;  %s4837_s0 = smov [#allocation7]  }
  0x75   : > { %p4693_p0 = scmp.ne.s32.totalorder %s5101_s11, %s4692_s14  ;;  %s4697_s22 = sshll.u32 %s4837_s0, 4  ;;  %s4698_s22 = int_to_ptr.vmem [resolvable:$false] %s4697_s22 }
  0x76   : > { %s4699_s29 = scalar_lea.vmem %s4698_s22, 256  ;;  %p4700_p4 = scmp.lt.s32.totalorder %s5101_s11, %s4698_s22 }
  0x77   : > { %p4695_p1 = pnand %p4693_p0, %p4679_p2  ;;  %p4701_p6 = scmp.lt.s32.totalorder %s4699_s29, %s4692_s14 }
  0x79   : > { %p4696_p9 = pneg %p4695_p1  ;;  %p4702_p10 = por %p4701_p6, %p4700_p4 }
  0x7b   : > { %p4703_p3 = pnand %p4702_p10, %p4696_p9 }
  0x7d   : > { %4706 = shalt.err (!%p4703_p3)
}
  0x7e   : > { %4505 = dma.hbm_to_vmem [thread:$0]  (!%p5097_p11), %s5092_s12, 128, %s5101_s11, %s553_s27  }
  0x7f   : > { %s570_s16 = sand.u32 1, %s4831_s19   ;;  %s574_s25 = scalar_lea.vmem [#allocation10], %s5083_s20 }
  0x80   : > { %s581_s15 = sshll.u32 %s574_s25, 4  ;;  %s571_s17 = scalar_lea.sflag [#allocation11], %s570_s16  ;;  %s582_s15 = int_to_ptr.vmem [resolvable:$true] %s581_s15 }
  0x81   : > { %s4707_s18 = scalar_lea.hbm %s5106_s23, 128  ;;  %s4712_s0 = scalar_lea.hbm %s5851_s26, 256 }
  0x82   : > { %p4708_p4 = scmp.ne.s32.totalorder %s5106_s23, %s4707_s18  ;;  %p4713_p5 = scmp.lt.u32.totalorder %s5106_s23, %s5851_s26 }
  0x83   : > { %p4714_p7 = scmp.lt.u32.totalorder %s4712_s0, %s4707_s18  ;;  %p4716_p0 = scmp.lt.u32.totalorder %s4707_s18, %s5106_s23 }
  0x84   : > { %p4710_p9 = pnand %p4708_p4, %p4679_p2 }
  0x85   : > { %p4715_p12 = por %p4714_p7, %p4713_p5 }
  0x86   : > { %p4711_p13 = pneg %p4710_p9 }
  0x87   : > { %p4717_p1 = por %p4716_p0, %p4715_p12 }
  0x89   : > { %p4718_p6 = pnand %p4717_p1, %p4711_p13 }
  0x8b   : > { %4721 = shalt.err (!%p4718_p6)
}
  0x8c   : > { %s4722_s11 = scalar_lea.vmem %s582_s15, 128  ;;  %s4838_s20 = smov [#allocation10]  }
  0x8d   : > { %p4723_p10 = scmp.ne.s32.totalorder %s582_s15, %s4722_s11  ;;  %s4727_s12 = sshll.u32 %s4838_s20, 4  ;;  %s4728_s12 = int_to_ptr.vmem [resolvable:$false] %s4727_s12 }
  0x8e   : > { %s4729_s27 = scalar_lea.vmem %s4728_s12, 256  ;;  %p4730_p9 = scmp.lt.s32.totalorder %s582_s15, %s4728_s12 }
  0x8f   : > { %p4725_p3 = pnand %p4723_p10, %p4679_p2  ;;  %p4731_p8 = scmp.lt.s32.totalorder %s4729_s27, %s4722_s11 }
  0x91   : > { %p4726_p4 = pneg %p4725_p3  ;;  %p4732_p5 = por %p4731_p8, %p4730_p9 }
  0x93   : > { %p4733_p7 = pnand %p4732_p5, %p4726_p4 }
  0x95   : > { %4736 = shalt.err (!%p4733_p7)
}
  0x96   : > { %4508 = dma.hbm_to_vmem [thread:$0]  (!%p5097_p11), %s5106_s23, 128, %s582_s15, %s571_s17  }
  0x97   : > { %p5852_p13 = scmp.ne.s32.totalorder %s5839_s2, 0 }
  0x98   : > { %s5157_s16 = sand.u32 (!%p5852_p13), 1, %s4815_s28   ;;  %p5853_p8 = scmp.ne.s32.totalorder (!%p5852_p13), %s5836_s21, 0 }
  0x99   : > { %590 = sbr.rel (%p5852_p13) target bundleno = 4474 (0x117a), region = 92  ;;  %s5160_s25 = sshll.u32 (!%p5852_p13), %s5157_s16, 3 }
  0x9a   : > { %s593_s18 = scalar_lea.sflag (!%p5852_p13), [#allocation8], %s5157_s16  ;;  %s596_s13 = scalar_lea.vmem (!%p5852_p13), [#allocation7], %s5160_s25 }
  0xa0   : > { %4790 = dma.done.wait (%p5853_p8), %s593_s18, 128  }
  0xa1   : > { %4792 = vsyncadd (%p5853_p8), %s593_s18, 4294967168  ;;  %s601_s2 = sand.u32 1, %s4978_s1   ;;  %s605_s23 = scalar_lea.vmem [#allocation10], %s5160_s25 }
  0xa2   : > { %s602_s30 = scalar_lea.sflag [#allocation11], %s601_s2 }
  0xa3   : > { %4794 = dma.done.wait (%p5853_p8), %s602_s30, 128  }
  0xa4   : > { %4796 = vsyncadd (%p5853_p8), %s602_s30, 4294967168  ;;  %p5854_p11 = scmp.eq.s32.totalorder %s4978_s1, 0 }
  0xa6   : > { %4798 = dma.done.wait (%p5854_p11), [#allocation11], 512   ;;  %p5855_p2 = pmov %p5854_p11 }
  0xa8   : > { %4800 = vsyncadd (%p5855_p2), [#allocation11], 4294966784  ;;  %p5856_p12 = pmov %p5855_p2 }
  0xa9   : > { %p5857_p0 = pmov %p5855_p2 }
  0xaa   : > { %4802 = dma.done.wait (%p5856_p12), [#allocation14], 512  }
  0xab   : > { %4804 = vsyncadd (%p5857_p0), [#allocation14], 4294966784  ;;  %vm679_vm0 = vcmask 261120   ;;  %v5182_v0 = vld [vmem:[%s596_s13] sm:$0xff]  ;;  %v709_v7 = vld [vmem:[%s5792_s5] sm:$0xff]  ;;  %v4839_v10 = vmov 0.0|0.0   ;;  %v801_v44 = vlaneseq }
  0xac   : > { %v680_v1 = vsel %vm679_vm0, %v5182_v0, 0.0  ;;  %v710_v8 = vld [vmem:[%s5792_s5 + $0x8] sm:$0xff]  ;;  %v711_v9 = vld [vmem:[%s5792_s5 + $0x10] sm:$0xff]  ;;  %4415 = vmatprep.subr.bf16.mxu1 %v4839_v10  ;;  %v712_v12 = vld [vmem:[%s5792_s5 + $0x18] sm:$0xff]  ;;  %vm4840_vm1 = vmmov 0   ;;  %v4841_v13 = vmov 0.0  }
  0xad   : > { %681 = vadd.xlane.f32.xlu0 %v680_v1  ;;  %v4416_v11 = vpack.c.bf16 %v710_v8, %v709_v7  ;;  %4231 = vmatprep.mubr.msk.f32.mxu1 %vm4840_vm1, %v4841_v13  ;;  %v4419_v14 = vpack.c.bf16 %v712_v12, %v711_v9  ;;  %s5858_s12 = sld [smem:[#allocation31_spill]]  ;;  %v1090_v21 = vld [vmem:[%s5797_s10] sm:$0xff]  ;;  %v1091_v22 = vld [vmem:[%s5797_s10 + $0x8] sm:$0xff]  ;;  %v1092_v27 = vld [vmem:[%s5797_s10 + $0x10] sm:$0xff]  ;;  %s4843_s13 = smov 120   ;;  %v5272_v45 = vshrl.u32 %v801_v44, 7 }
  0xae   : > { %4266 = vmatprep.subr.mxu0 %v4841_v13  ;;  %4268 = vmatprep.mubr.msk.f32.mxu0 %vm4840_vm1, %v4841_v13  ;;  %v4081_v23 = vld [vmem:[%s5790_s3] ss:$0 sm:$0xff]  ;;  %v4422_v25 = vpack.c.bf16 %v1091_v22, %v1090_v21  ;;  %v1093_v28 = vld [vmem:[%s5797_s10 + $0x18] sm:$0xff]  ;;  %v1482_v31 = vld [vmem:[%s5791_s4 + $0x8] sm:$0xff]  ;;  %s4844_s2 = smov 112   ;;  %v5274_v46 = vand.u32 127, %v801_v44 }
  0xaf   : > { %4417 = vmatpush3.bf16.msra.mxu1 %v4416_v11  ;;  %v4425_v29 = vpack.c.bf16 %v1093_v28, %v1092_v27  ;;  %v1481_v30 = vld [vmem:[%s5791_s4] sm:$0xff]  ;;  %v1483_v34 = vld [vmem:[%s5791_s4 + $0x10] sm:$0xff]  ;;  %v1484_v35 = vld [vmem:[%s5791_s4 + $0x18] sm:$0xff]  ;;  %v4845_v47 = vmov 1983009808   ;;  %vm932_vm3 = vcmask 64512  }
  0xb0   : > { %4418 = vmatprep.subr.bf16.mxu1 %v4839_v10  ;;  %v1089_v32 = vld [vmem:[%s605_s23] sm:$0xff]  ;;  %v4428_v33 = vpack.c.bf16 %v1482_v31, %v1481_v30  ;;  %v4431_v36 = vpack.c.bf16 %v1484_v35, %v1483_v34  ;;  %s4842_s23 = smov 104   ;;  %vm1477_vm2 = vcmp.gt.s32.totalorder %v5274_v46, %v5272_v45  ;;  %v799_v48 = vunpack.c.l.s4 %v4845_v47  ;;  %s4847_s30 = smov 96  }
  0xb1   : > { %v4846_v49 = vmov 1934713408   ;;  %s4848_s11 = smov 16   ;;  %s4849_s20 = smov 8   ;;  %vm2507_vm4 = vcmask 130048   ;;  %vm2509_vm5 = vcmask 195584  }
  0xb2   : > { %v831_v50 = vunpack.c.l.s4 %v4846_v49  ;;  %v800_v51 = vunpack.c.0.s8 %v799_v48  ;;  %s5860_s27 = sld [smem:[#allocation33_spill]]  ;;  %s5863_s17 = sld [smem:[#allocation36_spill]] }
  0xb3   : > { %4420 = vmatpush3.bf16.msra.mxu1 %v4419_v14  ;;  %v4080_v19 = vld [vmem:[%s5858_s12] ss:$0 sm:$0xff]  ;;  %s4850_s12 = smov 24   ;;  %s5864_s14 = sld [smem:[#allocation27_spill]] }
  0xb4   : > { %4421 = vmatprep.subr.bf16.mxu1 %v4839_v10  ;;  %v832_v54 = vunpack.c.0.s8 %v831_v50  ;;  %v5283_v55 = vsub.s32 %v800_v51, %v5272_v45  ;;  %s5865_s29 = sld [smem:[#allocation38_spill]]  ;;  %s670_s18 = scalar_lea.vmem [#allocation15], %s5160_s25 }
  0xb5   : > { %s3925_s21 = scalar_lea.sflag [#allocation9], %s5157_s16  ;;  %s4851_s25 = smov [#allocation15]  }
  0xb6   : > { %v5296_v61 = vsub.s32 %v832_v54, %v5272_v45  ;;  %s4741_s15 = sshll.u32 %s4851_s25, 4  ;;  %s4742_s15 = int_to_ptr.vmem [resolvable:$false] %s4741_s15 }
  0xb7   : > { %s4743_s1 = scalar_lea.vmem %s4742_s15, 256 }
  0xb9   : > { %p5867_p6 = scmp.ne.s32.totalorder %s5864_s14, 0 }
 0x13a   : > { %v682_v2 = vpop.xlane.xlu0 %681 }
 0x13b   : > { %v684_v3 = vmul.f32 0.03125, %v682_v2 }
 0x13d   : > { %v685_v4 = vsub.f32 %v5182_v0, %v684_v3 }
 0x13f   : > { %v686_v5 = vmul.f32 %v685_v4, %v685_v4 }
 0x141   : > { %v687_v6 = vsel %vm679_vm0, %v686_v5, 0.0 }
 0x142   : > { %688 = vadd.xlane.f32.xlu0 %v687_v6 }
 0x1cf   : > { %v689_v15 = vpop.xlane.xlu0 %688 }
 0x1d0   : > { %v690_v16 = vmul.f32 0.03125, %v689_v15 }
 0x1d2   : > { %v691_v17 = vadd.f32 1e-05, %v690_v16 }
 0x1d4   : > { %4583 = vrsqrt.f32 %v691_v17 }
 0x1de   : > { %v4584_v18 = vpop.eup %4583 }
 0x1df   : > { %v693_v20 = vmul.f32 %v4584_v18, %v685_v4 }
 0x1e1   : > { %v700_v24 = vmul.f32 %v4080_v19, %v693_v20 }
 0x1e3   : > { %v707_v26 = vadd.f32 %v4081_v23, %v700_v24 }
 0x1e5   : > { %708 = vst.msk [vmem:[#allocation2] sm:$0xff] %vm679_vm0, %v707_v26  ;;  %4232 = vmatmul.mubr.msk.f32.vlgmr.msra.gmra.mrb[0].mxu1 %vm679_vm0, %v707_v26 }
 0x1e6   : > { %4423 = vmatpush3.bf16.msra.mxu1 %v4422_v25  ;;  %4242 = vmatprep.mubr.msk.f32.mxu1 %vm4840_vm1, %v4841_v13 }
 0x1e7   : > { %4424 = vmatprep.subr.bf16.mxu1 %v4839_v10 }
 0x1ea   : > { %4426 = vmatpush3.bf16.msra.mxu1 %v4425_v29 }
 0x1eb   : > { %4427 = vmatprep.subr.bf16.mxu1 %v4839_v10 }
 0x1ec   : > { %v1480_v37 = vld [vmem:[#allocation2] sm:$0xff] }
 0x1ed   : > { %4243 = vmatmul.mubr.msk.f32.vlgmr.msra.gmra.mrb[2].mxu1 %vm679_vm0, %v1089_v32 }
 0x1ee   : > { %4429 = vmatpush3.bf16.msra.mxu1 %v4428_v33  ;;  %4253 = vmatprep.mubr.msk.f32.mxu1 %vm4840_vm1, %v4841_v13 }
 0x1ef   : > { %4430 = vmatprep.subr.bf16.mxu1 %v4839_v10 }
 0x1f2   : > { %4432 = vmatpush3.bf16.msra.mxu1 %v4431_v36 }
 0x1f3   : > { %4256 = vmatprep.subr.mxu1 %v4841_v13 }
 0x1f5   : > { %4254 = vmatmul.mubr.msk.f32.vlgmr.msra.gmra.mrb[4].mxu1 %vm679_vm0, %v1480_v37 }
 0x1f6   : > { %4258 = vmatprep.mubr.msk.f32.mxu1 %vm4840_vm1, %v4841_v13 }
 0x2b8   : > { %v5254_v38 = vpop.f32.mrb[0].mxu1 }
 0x2b9   : > { %793 = vrot.lane.b32.xlu0 %v5254_v38, %s4842_s23  ;;  %787 = vrot.lane.b32.xlu1 %v5254_v38, %s4843_s13  ;;  %v4233_v39 = vpop.f32.mrb[1].mxu1 }
 0x2bd   : > { %790 = vrot.lane.b32.xlu1 %v5254_v38, %s4844_s2 }
 0x2c0   : > { %v5262_v40 = vpop.f32.mrb[2].mxu1 }
 0x2c1   : > { %v4244_v41 = vpop.f32.mrb[3].mxu1 }
 0x2c8   : > { %v5264_v42 = vpop.f32.mrb[4].mxu1 }
 0x2c9   : > { %1560 = vrot.lane.b32.xlu1 %v5264_v42, %s4843_s13  ;;  %v4255_v43 = vpop.f32.mrb[5].mxu1 }
 0x2cd   : > { %1563 = vrot.lane.b32.xlu1 %v5264_v42, %s4844_s2 }
 0x2d1   : > { %1566 = vrot.lane.b32.xlu1 %v5264_v42, %s4842_s23 }
 0x32b   : > { %v5278_v52 = vpop.permute.xlu0 %793  ;;  %v5280_v53 = vpop.permute.xlu1 %787 }
 0x32c   : > { %v812_v56 = vcombine.low %v5280_v53, %v5278_v52  ;;  %v813_v57 = vcombine.high %v5280_v53, %v5278_v52 }
 0x32e   : > { %v820_v62 = vrot.slane %v812_v56, %v5283_v55  ;;  %v827_v63 = vrot.slane %v813_v57, %v5283_v55 }
 0x32f   : > { %v5289_v58 = vpop.permute.xlu1 %790 }
 0x330   : > { %v796_v59 = vcombine.low %v5254_v38, %v5289_v58  ;;  %v797_v60 = vcombine.high %v5254_v38, %v5289_v58 }
 0x332   : > { %v804_v1 = vrot.slane %v796_v59, %v5283_v55  ;;  %v811_v2 = vrot.slane %v797_v60, %v5283_v55 }
 0x334   : > { %v828_v3 = vcombine.low %v804_v1, %v820_v62  ;;  %v829_v4 = vcombine.high %v804_v1, %v820_v62  ;;  %v844_v5 = vcombine.low %v811_v2, %v827_v63  ;;  %v845_v6 = vcombine.high %v811_v2, %v827_v63 }
 0x336   : > { %v836_v7 = vrot.slane %v828_v3, %v5296_v61  ;;  %v843_v8 = vrot.slane %v829_v4, %v5296_v61  ;;  %v852_v9 = vrot.slane %v844_v5, %v5296_v61  ;;  %v859_v11 = vrot.slane %v845_v6, %v5296_v61 }
 0x338   : > { %v864_v12 = vcombine.low %v836_v7, %v843_v8  ;;  %v4083_v14 = vcombine.high %v836_v7, %v843_v8  ;;  %v880_v15 = vcombine.low %v852_v9, %v859_v11  ;;  %v4084_v16 = vcombine.high %v852_v9, %v859_v11 }
 0x33a   : > { %v871_v17 = vrot.slane %v864_v12, %v5283_v55  ;;  %v879_v18 = vrot.slane %v4083_v14, %v5283_v55  ;;  %v887_v19 = vrot.slane %v880_v15, %v5283_v55  ;;  %v895_v20 = vrot.slane %v4084_v16, %v5283_v55 }
 0x33b   : > { %v1561_v21 = vpop.permute.xlu1 %1560 }
 0x33c   : > { %v896_v22 = vcombine.low %v871_v17, %v879_v18  ;;  %v897_v23 = vcombine.high %v871_v17, %v879_v18  ;;  %v912_v24 = vcombine.low %v887_v19, %v895_v20  ;;  %v913_v25 = vcombine.high %v887_v19, %v895_v20 }
 0x33e   : > { %v904_v26 = vrot.slane %v896_v22, %v5296_v61  ;;  %v911_v27 = vrot.slane %v897_v23, %v5296_v61  ;;  %v920_v28 = vrot.slane %v912_v24, %v5296_v61  ;;  %v927_v29 = vrot.slane %v913_v25, %v5296_v61 }
 0x33f   : > { %v1564_v30 = vpop.permute.xlu1 %1563  ;;  %v1478_v24 = vsel %vm1477_vm2, -1e+30, %v4841_v13 }
 0x340   : > { %v928_v31 = vcombine.low %v904_v26, %v920_v28  ;;  %v929_v32 = vcombine.high %v904_v26, %v920_v28  ;;  %v930_v33 = vcombine.low %v911_v27, %v927_v29  ;;  %v931_v34 = vcombine.high %v911_v27, %v927_v29 }
 0x341   : > { %v1569_v35 = vcombine.low %v5264_v42, %v1564_v30  ;;  %v1570_v36 = vcombine.high %v5264_v42, %v1564_v30 }
 0x342   : > { %933 = vst.msk [vmem:[#allocation3] sm:$0xff] %vm932_vm3, %v928_v31  ;;  %934 = vst.msk [vmem:[#allocation3 + $0x8] sm:$0xff] %vm932_vm3, %v929_v32 }
 0x343   : > { %935 = vst.msk [vmem:[#allocation3 + $0x10] sm:$0xff] %vm932_vm3, %v930_v33  ;;  %936 = vst.msk [vmem:[#allocation3 + $0x18] sm:$0xff] %vm932_vm3, %v931_v34  ;;  %v1567_v37 = vpop.permute.xlu1 %1566  ;;  %v1577_v43 = vrot.slane %v1569_v35, %v5283_v55  ;;  %v1584_v44 = vrot.slane %v1570_v36, %v5283_v55 }
 0x344   : > { %v1585_v39 = vcombine.low %v1561_v21, %v1567_v37  ;;  %v1586_v41 = vcombine.high %v1561_v21, %v1567_v37 }
 0x346   : > { %v1593_v47 = vrot.slane %v1585_v39, %v5283_v55  ;;  %v1600_v48 = vrot.slane %v1586_v41, %v5283_v55 }
 0x348   : > { %v1601_v49 = vcombine.low %v1577_v43, %v1593_v47  ;;  %v1602_v50 = vcombine.high %v1577_v43, %v1593_v47  ;;  %v1617_v51 = vcombine.low %v1584_v44, %v1600_v48  ;;  %v1618_v54 = vcombine.high %v1584_v44, %v1600_v48 }
 0x349   : > { %v1705_v56 = vld [vmem:[#allocation3] sm:$0xff]  ;;  %v1706_v20 = vld [vmem:[#allocation3 + $0x8] sm:$0xff] }
 0x34a   : > { %v1707_v57 = vld [vmem:[#allocation3 + $0x10] sm:$0xff]  ;;  %v1609_v59 = vrot.slane %v1601_v49, %v5296_v61  ;;  %v1616_v42 = vrot.slane %v1602_v50, %v5296_v61  ;;  %v1625_v60 = vrot.slane %v1617_v51, %v5296_v61  ;;  %v1632_v62 = vrot.slane %v1618_v54, %v5296_v61  ;;  %4257 = vmatpush3.xpose.msk.msra.mxu1 %vm932_vm3, %v1705_v56  ;;  %v1708_v22 = vld [vmem:[#allocation3 + $0x18] sm:$0xff] }
 0x34b   : > { %4267 = vmatpush3.xpose.msk.msra.mxu0 %vm932_vm3, %v1707_v57  ;;  %4261 = vmatprep.subr.mxu1 %v4841_v13 }
 0x34c   : > { %v1637_v63 = vcombine.low %v1609_v59, %v1616_v42  ;;  %v4093_v1 = vcombine.high %v1609_v59, %v1616_v42  ;;  %v1653_v2 = vcombine.low %v1625_v60, %v1632_v62  ;;  %v4094_v3 = vcombine.high %v1625_v60, %v1632_v62  ;;  %4276 = vmatprep.subr.mxu0 %v4841_v13 }
 0x34e   : > { %v1644_v4 = vrot.slane %v1637_v63, %v5283_v55  ;;  %v1652_v5 = vrot.slane %v4093_v1, %v5283_v55  ;;  %v1660_v6 = vrot.slane %v1653_v2, %v5283_v55  ;;  %v1668_v7 = vrot.slane %v4094_v3, %v5283_v55 }
 0x350   : > { %v1669_v8 = vcombine.low %v1644_v4, %v1652_v5  ;;  %v1685_v9 = vcombine.low %v1660_v6, %v1668_v7  ;;  %v1670_v11 = vcombine.high %v1644_v4, %v1652_v5  ;;  %v1686_v12 = vcombine.high %v1660_v6, %v1668_v7 }
 0x352   : > { %v1677_v14 = vrot.slane %v1669_v8, %v5296_v61  ;;  %v1693_v15 = vrot.slane %v1685_v9, %v5296_v61  ;;  %v1684_v16 = vrot.slane %v1670_v11, %v5296_v61  ;;  %v1700_v17 = vrot.slane %v1686_v12, %v5296_v61 }
 0x354   : > { %v1701_v18 = vcombine.low %v1677_v14, %v1693_v15  ;;  %v1703_v19 = vcombine.low %v1684_v16, %v1700_v17  ;;  %v1702_v21 = vcombine.high %v1677_v14, %v1693_v15  ;;  %v1704_v23 = vcombine.high %v1684_v16, %v1700_v17 }
 0x356   : > { %4259 = vmatmul.mubr.msk.f32.vlgmr.msra.gmra.mrb[6].mxu1 %vm932_vm3, %v1701_v18  ;;  %4269 = vmatmul.mubr.msk.f32.vlgmr.msra.gmra.mrb[0].mxu0 %vm932_vm3, %v1703_v19 }
 0x357   : > { %4262 = vmatpush3.xpose.msk.msra.mxu1 %vm932_vm3, %v1706_v20  ;;  %4263 = vmatprep.mubr.msk.f32.mxu1 %vm4840_vm1, %v4841_v13 }
 0x358   : > { %4271 = vmatprep.subr.mxu1 %v4841_v13  ;;  %4278 = vmatprep.mubr.msk.f32.mxu0 %vm4840_vm1, %v4841_v13 }
 0x35a   : > { %4264 = vmatmul.mubr.msk.f32.vlgmr.msra.gmra.mrb[8].mxu1 %vm932_vm3, %v1702_v21 }
 0x35b   : > { %4272 = vmatpush3.xpose.msk.msra.mxu1 %vm932_vm3, %v1708_v22  ;;  %4273 = vmatprep.mubr.msk.f32.mxu1 %vm4840_vm1, %v4841_v13 }
 0x35c   : > { %4281 = vmatprep.subr.mxu1 %v4841_v13 }
 0x35e   : > { %4274 = vmatmul.mubr.msk.f32.vlgmr.msra.gmra.mrb[10].mxu1 %vm932_vm3, %v1704_v23 }
 0x35f   : > { %4283 = vmatprep.mubr.msk.f32.mxu1 %vm4840_vm1, %v4841_v13 }
 0x429   : > { %v1790_v25 = vpop.f32.mrb[6].mxu1  ;;  %v1942_v26 = vpop.f32.mrb[0].mxu0 }
 0x42a   : > { %v1791_v27 = vadd.f32 %v1790_v25, %v1478_v24  ;;  %v1943_v28 = vadd.f32 %v1942_v26, %v1478_v24  ;;  %v4260_v29 = vpop.f32.mrb[7].mxu1  ;;  %v4270_v30 = vpop.f32.mrb[1].mxu0 }
 0x42c   : > { %v2022_v31 = vsel %vm932_vm3, %v1791_v27, -inf  ;;  %v2028_v35 = vsel %vm932_vm3, %v1943_v28, -inf }
 0x42d   : > { %2023 = vmax.xlane.f32.xlu1 %v2022_v31  ;;  %v1866_v32 = vpop.f32.mrb[8].mxu1 }
 0x42e   : > { %v1867_v33 = vadd.f32 %v1866_v32, %v1478_v24  ;;  %v4265_v34 = vpop.f32.mrb[9].mxu1 }
 0x430   : > { %v2025_v36 = vsel %vm932_vm3, %v1867_v33, -inf }
 0x431   : > { %2029 = vmax.xlane.f32.xlu1 %v2028_v35  ;;  %2026 = vmax.xlane.f32.xlu0 %v2025_v36  ;;  %v2018_v45 = vpop.f32.mrb[10].mxu1 }
 0x432   : > { %v2019_v46 = vadd.f32 %v2018_v45, %v1478_v24  ;;  %v4275_v37 = vpop.f32.mrb[11].mxu1 }
 0x434   : > { %v2031_v39 = vsel %vm932_vm3, %v2019_v46, -inf }
 0x435   : > { %2032 = vmax.xlane.f32.xlu1 %v2031_v39 }
 0x446   : > { %939 = vrot.lane.b32.xlu1 %v5280_v53, %s4847_s30 }
 0x447   : > { %937 = vrot.lane.b32.xlu0 %v5254_v38, %s4847_s30 }
 0x44a   : > { %941 = vrot.lane.b32.xlu1 %v5289_v58, %s4847_s30 }
 0x44b   : > { %943 = vrot.lane.b32.xlu0 %v5278_v52, %s4847_s30 }
 0x4ba   : > { %v2024_v41 = vpop.xlane.xlu1 %2023 }
 0x4bb   : > { %v2034_v43 = vsub.f32 %v1791_v27, %v2024_v41 }
 0x4bd   : > { %v2038_v44 = vmul.f32 1.442695, %v2034_v43 }
 0x4be   : > { %v2030_v47 = vpop.xlane.xlu1 %2029  ;;  %v2027_v48 = vpop.xlane.xlu0 %2026 }
 0x4bf   : > { %4585 = vpow2.f32 %v2038_v44  ;;  %v2036_v49 = vsub.f32 %v1943_v28, %v2030_v47  ;;  %v2035_v50 = vsub.f32 %v1867_v33, %v2027_v48 }
 0x4c1   : > { %v2040_v51 = vmul.f32 1.442695, %v2035_v50  ;;  %v2042_v54 = vmul.f32 1.442695, %v2036_v49 }
 0x4c2   : > { %v938_v53 = vpop.permute.xlu0 %937  ;;  %v2033_v56 = vpop.xlane.xlu1 %2032 }
 0x4c3   : > { %v2037_v57 = vsub.f32 %v2019_v46, %v2033_v56  ;;  %4587 = vpow2.f32 %v2040_v51 }
 0x4c4   : > { %4589 = vpow2.f32 %v2042_v54 }
 0x4c5   : > { %v2044_v38 = vmul.f32 1.442695, %v2037_v57 }
 0x4c6   : > { %v944_v58 = vpop.permute.xlu0 %943  ;;  %v940_v59 = vpop.permute.xlu1 %939 }
 0x4c7   : > { %4591 = vpow2.f32 %v2044_v38  ;;  %v965_v42 = vcombine.low %v940_v59, %v944_v58  ;;  %v966_v60 = vcombine.high %v940_v59, %v944_v58 }
 0x4c9   : > { %v5372_v52 = vpop.eup %4585  ;;  %v973_v3 = vrot.slane %v965_v42, %v5283_v55  ;;  %v980_v4 = vrot.slane %v966_v60, %v5283_v55 }
 0x4ca   : > { %v942_v62 = vpop.permute.xlu1 %941  ;;  %v2046_v63 = vsel %vm932_vm3, %v5372_v52, 0.0 }
 0x4cb   : > { %v949_v1 = vcombine.low %v938_v53, %v942_v62  ;;  %v950_v2 = vcombine.high %v938_v53, %v942_v62  ;;  %2047 = vadd.xlane.f32.xlu1 %v2046_v63  ;;  %v1713_v62 = vld [vmem:[%s5793_s6] sm:$0xff]  ;;  %v1714_v63 = vld [vmem:[%s5793_s6 + $0x8] sm:$0xff] }
 0x4cd   : > { %v957_v5 = vrot.slane %v949_v1, %v5283_v55  ;;  %v964_v6 = vrot.slane %v950_v2, %v5283_v55  ;;  %v5380_v7 = vpop.eup %4587  ;;  %v4434_v1 = vpack.c.bf16 %v1714_v63, %v1713_v62 }
 0x4ce   : > { %v5382_v14 = vpop.eup %4589  ;;  %v2049_v15 = vsel %vm932_vm3, %v5380_v7, 0.0 }
 0x4cf   : > { %v981_v8 = vcombine.low %v957_v5, %v973_v3  ;;  %v982_v9 = vcombine.high %v957_v5, %v973_v3  ;;  %v997_v11 = vcombine.low %v964_v6, %v980_v4  ;;  %v998_v12 = vcombine.high %v964_v6, %v980_v4  ;;  %2050 = vadd.xlane.f32.xlu0 %v2049_v15 }
 0x4d0   : > { %v2052_v26 = vsel %vm932_vm3, %v5382_v14, 0.0 }
 0x4d1   : > { %v4592_v16 = vpop.eup %4591  ;;  %v989_v17 = vrot.slane %v981_v8, %v5296_v61  ;;  %v996_v18 = vrot.slane %v982_v9, %v5296_v61  ;;  %v1005_v19 = vrot.slane %v997_v11, %v5296_v61  ;;  %v1012_v20 = vrot.slane %v998_v12, %v5296_v61 }
 0x4d2   : > { %v2055_v21 = vsel %vm932_vm3, %v4592_v16, 0.0 }
 0x4d3   : > { %v1017_v22 = vcombine.low %v989_v17, %v996_v18  ;;  %v4085_v23 = vcombine.high %v989_v17, %v996_v18  ;;  %v1033_v24 = vcombine.low %v1005_v19, %v1012_v20  ;;  %v4086_v25 = vcombine.high %v1005_v19, %v1012_v20  ;;  %2056 = vadd.xlane.f32.xlu1 %v2055_v21 }
 0x4d4   : > { %2053 = vadd.xlane.f32.xlu0 %v2052_v26 }
 0x4d5   : > { %v1024_v27 = vrot.slane %v1017_v22, %v5283_v55  ;;  %v1032_v28 = vrot.slane %v4085_v23, %v5283_v55  ;;  %v1040_v29 = vrot.slane %v1033_v24, %v5283_v55  ;;  %v1048_v30 = vrot.slane %v4086_v25, %v5283_v55  ;;  %v1715_v24 = vld [vmem:[%s5793_s6 + $0x10] sm:$0xff]  ;;  %v1716_v25 = vld [vmem:[%s5793_s6 + $0x18] sm:$0xff] }
 0x4d7   : > { %v1049_v31 = vcombine.low %v1024_v27, %v1032_v28  ;;  %v1050_v32 = vcombine.high %v1024_v27, %v1032_v28  ;;  %v1065_v33 = vcombine.low %v1040_v29, %v1048_v30  ;;  %v1066_v34 = vcombine.high %v1040_v29, %v1048_v30 }
 0x4d8   : > { %v4437_v30 = vpack.c.bf16 %v1716_v25, %v1715_v24 }
 0x4d9   : > { %v1057_v35 = vrot.slane %v1049_v31, %v5296_v61  ;;  %v1064_v36 = vrot.slane %v1050_v32, %v5296_v61  ;;  %v1073_v45 = vrot.slane %v1065_v33, %v5296_v61  ;;  %v1080_v46 = vrot.slane %v1066_v34, %v5296_v61 }
 0x4db   : > { %v1081_v37 = vcombine.low %v1057_v35, %v1073_v45  ;;  %v1082_v39 = vcombine.high %v1057_v35, %v1073_v45  ;;  %v1083_v41 = vcombine.low %v1064_v36, %v1080_v46  ;;  %v1084_v43 = vcombine.high %v1064_v36, %v1080_v46 }
 0x4dd   : > { %1085 = vst.msk [vmem:[#allocation4] sm:$0xff] %vm932_vm3, %v1081_v37  ;;  %1086 = vst.msk [vmem:[#allocation4 + $0x8] sm:$0xff] %vm932_vm3, %v1082_v39 }
 0x4de   : > { %1087 = vst.msk [vmem:[#allocation4 + $0x10] sm:$0xff] %vm932_vm3, %v1083_v41  ;;  %1088 = vst.msk [vmem:[#allocation4 + $0x18] sm:$0xff] %vm932_vm3, %v1084_v43 }
 0x4e4   : > { %v1709_v44 = vld [vmem:[#allocation4] sm:$0xff]  ;;  %v1710_v47 = vld [vmem:[#allocation4 + $0x8] sm:$0xff] }
 0x4e5   : > { %4277 = vmatpush3.msra.mxu0 %v1709_v44  ;;  %4282 = vmatpush3.msra.mxu1 %v1710_v47  ;;  %v1711_v56 = vld [vmem:[#allocation4 + $0x10] sm:$0xff]  ;;  %v1712_v42 = vld [vmem:[#allocation4 + $0x18] sm:$0xff] }
 0x4e6   : > { %4286 = vmatprep.subr.mxu0 %v4841_v13  ;;  %4291 = vmatprep.subr.mxu1 %v4841_v13 }
 0x558   : > { %v2048_v48 = vpop.xlane.xlu1 %2047 }
 0x559   : > { %4593 = vrcp.f32 %v2048_v48 }
 0x55c   : > { %v2051_v49 = vpop.xlane.xlu0 %2050 }
 0x55d   : > { %4595 = vrcp.f32 %v2051_v49 }
 0x560   : > { %v2057_v50 = vpop.xlane.xlu1 %2056 }
 0x561   : > { %4597 = vrcp.f32 %v2057_v50  ;;  %v2054_v51 = vpop.xlane.xlu0 %2053 }
 0x562   : > { %4599 = vrcp.f32 %v2054_v51 }
 0x563   : > { %v4594_v54 = vpop.eup %4593 }
 0x564   : > { %v2059_v53 = vmul.f32 %v4594_v54, %v5372_v52 }
 0x566   : > { %4279 = vmatmul.mubr.msk.f32.vlgmr.msra.gmra.mrb[2].mxu0 %vm932_vm3, %v2059_v53 }
 0x567   : > { %4287 = vmatpush3.msra.mxu0 %v1711_v56  ;;  %4288 = vmatprep.mubr.msk.f32.mxu0 %vm4840_vm1, %v4841_v13  ;;  %v4596_v57 = vpop.eup %4595 }
 0x568   : > { %4433 = vmatprep.subr.bf16.mxu0 %v4839_v10  ;;  %v2061_v38 = vmul.f32 %v4596_v57, %v5380_v7 }
 0x56a   : > { %4284 = vmatmul.mubr.msk.f32.vlgmr.msra.gmra.mrb[12].mxu1 %vm932_vm3, %v2061_v38 }
 0x56b   : > { %v4598_v58 = vpop.eup %4597  ;;  %4292 = vmatpush3.msra.mxu1 %v1712_v42  ;;  %4293 = vmatprep.mubr.msk.f32.mxu1 %vm4840_vm1, %v4841_v13 }
 0x56c   : > { %v2065_v59 = vmul.f32 %v4598_v58, %v4592_v16  ;;  %v4600_v60 = vpop.eup %4599  ;;  %4439 = vmatprep.subr.bf16.mxu1 %v4839_v10 }
 0x56d   : > { %v2063_v52 = vmul.f32 %v4600_v60, %v5382_v14 }
 0x56e   : > { %4294 = vmatmul.mubr.msk.f32.vlgmr.msra.gmra.mrb[14].mxu1 %vm932_vm3, %v2065_v59 }
 0x56f   : > { %4289 = vmatmul.mubr.msk.f32.vlgmr.msra.gmra.mrb[4].mxu0 %vm932_vm3, %v2063_v52  ;;  %4315 = vmatprep.mubr.msk.f32.mxu1 %vm4840_vm1, %v4841_v13 }
 0x570   : > { %4304 = vmatprep.mubr.msk.f32.mxu0 %vm4840_vm1, %v4841_v13  ;;  %4435 = vmatpush3.bf16.msra.mxu0 %v4434_v1 }
 0x571   : > { %4436 = vmatprep.subr.bf16.mxu0 %v4839_v10 }
 0x574   : > { %4438 = vmatpush3.bf16.msra.mxu0 %v4437_v30 }
 0x575   : > { %4318 = vmatprep.subr.mxu0 %v4841_v13 }
 0x639   : > { %v2135_v2 = vpop.f32.mrb[2].mxu0 }
 0x63a   : > { %v4280_v3 = vpop.f32.mrb[3].mxu0 }
 0x63d   : > { %v2208_v4 = vpop.f32.mrb[12].mxu1 }
 0x63e   : > { %v4285_v5 = vpop.f32.mrb[13].mxu1 }
 0x641   : > { %v2354_v7 = vpop.f32.mrb[14].mxu1 }
 0x642   : > { %v2281_v6 = vpop.f32.mrb[4].mxu0  ;;  %v2374_v11 = vcombine.low %v2208_v4, %v2354_v7  ;;  %v2375_v12 = vcombine.high %v2208_v4, %v2354_v7  ;;  %v4295_v15 = vpop.f32.mrb[15].mxu1 }
 0x643   : > { %v2358_v8 = vcombine.low %v2135_v2, %v2281_v6  ;;  %v2359_v9 = vcombine.high %v2135_v2, %v2281_v6  ;;  %v4290_v14 = vpop.f32.mrb[5].mxu0  ;;  %v2616_v6 = vld [vmem:[%s5796_s9 + $0x8] sm:$0xff] }
 0x644   : > { %v2382_v18 = vrot.slane %v2374_v11, %v5283_v55  ;;  %v2389_v19 = vrot.slane %v2375_v12, %v5283_v55 }
 0x645   : > { %v2366_v16 = vrot.slane %v2358_v8, %v5283_v55  ;;  %v2373_v17 = vrot.slane %v2359_v9, %v5283_v55  ;;  %v2617_v8 = vld [vmem:[%s5796_s9 + $0x10] sm:$0xff]  ;;  %v2618_v9 = vld [vmem:[%s5796_s9 + $0x18] sm:$0xff] }
 0x646   : > { %v4443_v11 = vpack.c.bf16 %v2618_v9, %v2617_v8 }
 0x647   : > { %v2390_v20 = vcombine.low %v2366_v16, %v2382_v18  ;;  %v2391_v21 = vcombine.high %v2366_v16, %v2382_v18  ;;  %v2406_v22 = vcombine.low %v2373_v17, %v2389_v19  ;;  %v2407_v23 = vcombine.high %v2373_v17, %v2389_v19 }
 0x649   : > { %v2398_v26 = vrot.slane %v2390_v20, %v5296_v61  ;;  %v2405_v27 = vrot.slane %v2391_v21, %v5296_v61  ;;  %v2414_v28 = vrot.slane %v2406_v22, %v5296_v61  ;;  %v2421_v29 = vrot.slane %v2407_v23, %v5296_v61 }
 0x64b   : > { %v2426_v31 = vcombine.low %v2398_v26, %v2405_v27  ;;  %v4107_v32 = vcombine.high %v2398_v26, %v2405_v27  ;;  %v2442_v33 = vcombine.low %v2414_v28, %v2421_v29  ;;  %v4108_v34 = vcombine.high %v2414_v28, %v2421_v29 }
 0x64d   : > { %v2433_v35 = vrot.slane %v2426_v31, %v5283_v55  ;;  %v2441_v36 = vrot.slane %v4107_v32, %v5283_v55  ;;  %v2449_v45 = vrot.slane %v2442_v33, %v5283_v55  ;;  %v2457_v46 = vrot.slane %v4108_v34, %v5283_v55 }
 0x64f   : > { %v2459_v37 = vcombine.high %v2433_v35, %v2441_v36  ;;  %v2475_v39 = vcombine.high %v2449_v45, %v2457_v46  ;;  %v2458_v41 = vcombine.low %v2433_v35, %v2441_v36  ;;  %v2474_v43 = vcombine.low %v2449_v45, %v2457_v46 }
 0x651   : > { %v2473_v44 = vrot.slane %v2459_v37, %v5296_v61  ;;  %v2489_v47 = vrot.slane %v2475_v39, %v5296_v61  ;;  %v2466_v48 = vrot.slane %v2458_v41, %v5296_v61  ;;  %v2482_v49 = vrot.slane %v2474_v43, %v5296_v61 }
 0x653   : > { %v2492_v50 = vcombine.low %v2473_v44, %v2489_v47  ;;  %v2491_v51 = vcombine.high %v2466_v48, %v2482_v49  ;;  %v2493_v54 = vcombine.high %v2473_v44, %v2489_v47  ;;  %v2490_v53 = vcombine.low %v2466_v48, %v2482_v49  ;;  %v4110_v47 = vld [vmem:[%s5794_s7] ss:$0 sm:$0xff] }
 0x655   : > { %2499 = vrot.lane.b32.xlu1 %v2492_v50, %s4848_s11  ;;  %2495 = vrot.lane.b32.xlu0 %v2491_v51, %s4849_s20 }
 0x659   : > { %2503 = vrot.lane.b32.xlu1 %v2493_v54, %s4850_s12 }
 0x6c7   : > { %v2500_v56 = vpop.permute.xlu1 %2499  ;;  %v2496_v57 = vpop.permute.xlu0 %2495 }
 0x6c8   : > { %v2506_v38 = vsel %vm932_vm3, %v2490_v53, %v2496_v57  ;;  %v4111_v53 = vld [vmem:[%s5795_s8] ss:$0 sm:$0xff] }
 0x6c9   : > { %v2508_v59 = vsel %vm2507_vm4, %v2506_v38, %v2500_v56 }
 0x6cb   : > { %v2504_v58 = vpop.permute.xlu1 %2503 }
 0x6cc   : > { %v2510_v42 = vsel %vm2509_vm5, %v2508_v59, %v2504_v58 }
 0x6cd   : > { %4305 = vmatmul.mubr.msk.f32.vlgmr.msra.gmra.mrb[6].mxu0 %vm679_vm0, %v2510_v42 }
 0x6ce   : > { %4320 = vmatprep.mubr.msk.f32.mxu0 %vm4840_vm1, %v4841_v13 }
 0x7a0   : > { %v2580_v60 = vpop.f32.mrb[6].mxu0 }
 0x7a1   : > { %v5464_v52 = vadd.f32 %v2580_v60, %v5182_v0  ;;  %v4306_v62 = vpop.f32.mrb[7].mxu0  ;;  %v2615_v0 = vld [vmem:[%s5796_s9] sm:$0xff] }
 0x7a2   : > { %v4440_v7 = vpack.c.bf16 %v2616_v6, %v2615_v0 }
 0x7a3   : > { %v2587_v63 = vsel %vm679_vm0, %v5464_v52, 0.0 }
 0x7a4   : > { %2588 = vadd.xlane.f32.xlu0 %v2587_v63  ;;  %4441 = vmatpush3.bf16.msra.mxu1 %v4440_v7 }
 0x7a5   : > { %4442 = vmatprep.subr.bf16.mxu1 %v4839_v10 }
 0x7a8   : > { %4444 = vmatpush3.bf16.msra.mxu1 %v4443_v11 }
 0x7a9   : > { %4323 = vmatprep.subr.mxu1 %v4841_v13 }
 0x7ba   : > { %1168 = vrot.lane.b32.xlu0 %v5262_v40, %s4843_s13 }
 0x7be   : > { %1174 = vrot.lane.b32.xlu0 %v5262_v40, %s4842_s23 }
 0x831   : > { %v2589_v1 = vpop.xlane.xlu0 %2588 }
 0x832   : > { %v2591_v2 = vmul.f32 0.03125, %v2589_v1 }
 0x834   : > { %v2592_v3 = vsub.f32 %v5464_v52, %v2591_v2 }
 0x835   : > { %v5490_v12 = vpop.permute.xlu0 %1168 }
 0x836   : > { %v2593_v4 = vmul.f32 %v2592_v3, %v2592_v3 }
 0x838   : > { %v2594_v5 = vsel %vm679_vm0, %v2593_v4, 0.0 }
 0x839   : > { %2595 = vadd.xlane.f32.xlu1 %v2594_v5  ;;  %v5492_v14 = vpop.permute.xlu0 %1174 }
 0x83a   : > { %v1193_v17 = vcombine.low %v5490_v12, %v5492_v14  ;;  %v1194_v18 = vcombine.high %v5490_v12, %v5492_v14 }
 0x83c   : > { %v1201_v23 = vrot.slane %v1193_v17, %v5283_v55  ;;  %v1208_v24 = vrot.slane %v1194_v18, %v5283_v55 }
 0x84a   : > { %1171 = vrot.lane.b32.xlu1 %v5262_v40, %s4844_s2 }
 0x8c6   : > { %v2596_v15 = vpop.xlane.xlu1 %2595 }
 0x8c7   : > { %v2597_v16 = vmul.f32 0.03125, %v2596_v15 }
 0x8c9   : > { %v2598_v19 = vadd.f32 1e-05, %v2597_v16 }
 0x8ca   : > { %v5498_v20 = vpop.permute.xlu1 %1171 }
 0x8cb   : > { %4601 = vrsqrt.f32 %v2598_v19  ;;  %v1177_v21 = vcombine.low %v5262_v40, %v5498_v20  ;;  %v1178_v22 = vcombine.high %v5262_v40, %v5498_v20 }
 0x8cd   : > { %v1185_v25 = vrot.slane %v1177_v21, %v5283_v55  ;;  %v1192_v26 = vrot.slane %v1178_v22, %v5283_v55 }
 0x8cf   : > { %v1209_v27 = vcombine.low %v1185_v25, %v1201_v23  ;;  %v1210_v28 = vcombine.high %v1185_v25, %v1201_v23  ;;  %v1225_v29 = vcombine.low %v1192_v26, %v1208_v24  ;;  %v1226_v30 = vcombine.high %v1192_v26, %v1208_v24 }
 0x8d1   : > { %v1217_v31 = vrot.slane %v1209_v27, %v5296_v61  ;;  %v1224_v32 = vrot.slane %v1210_v28, %v5296_v61  ;;  %v1233_v33 = vrot.slane %v1225_v29, %v5296_v61  ;;  %v1240_v34 = vrot.slane %v1226_v30, %v5296_v61 }
 0x8d3   : > { %v1245_v35 = vcombine.low %v1217_v31, %v1224_v32  ;;  %v4088_v36 = vcombine.high %v1217_v31, %v1224_v32  ;;  %v1261_v45 = vcombine.low %v1233_v33, %v1240_v34  ;;  %v4089_v46 = vcombine.high %v1233_v33, %v1240_v34 }
 0x8d5   : > { %v4602_v37 = vpop.eup %4601  ;;  %v1252_v39 = vrot.slane %v1245_v35, %v5283_v55  ;;  %v1260_v41 = vrot.slane %v4088_v36, %v5283_v55  ;;  %v1268_v43 = vrot.slane %v1261_v45, %v5283_v55  ;;  %v1276_v44 = vrot.slane %v4089_v46, %v5283_v55 }
 0x8d6   : > { %v2600_v48 = vmul.f32 %v4602_v37, %v2592_v3 }
 0x8d7   : > { %v1277_v49 = vcombine.low %v1252_v39, %v1260_v41  ;;  %v1278_v50 = vcombine.high %v1252_v39, %v1260_v41  ;;  %v1293_v51 = vcombine.low %v1268_v43, %v1276_v44  ;;  %v1294_v54 = vcombine.high %v1268_v43, %v1276_v44 }
 0x8d8   : > { %v2607_v56 = vmul.f32 %v4110_v47, %v2600_v48 }
 0x8d9   : > { %v1285_v57 = vrot.slane %v1277_v49, %v5296_v61  ;;  %v1292_v38 = vrot.slane %v1278_v50, %v5296_v61  ;;  %v1301_v58 = vrot.slane %v1293_v51, %v5296_v61  ;;  %v1308_v59 = vrot.slane %v1294_v54, %v5296_v61 }
 0x8da   : > { %v2614_v42 = vadd.f32 %v4111_v53, %v2607_v56 }
 0x8db   : > { %v1309_v60 = vcombine.low %v1285_v57, %v1301_v58  ;;  %v1310_v62 = vcombine.high %v1285_v57, %v1301_v58  ;;  %v1311_v63 = vcombine.low %v1292_v38, %v1308_v59  ;;  %v1312_v1 = vcombine.high %v1292_v38, %v1308_v59 }
 0x8dc   : > { %4316 = vmatmul.mubr.msk.f32.vlgmr.msra.gmra.mrb[16].mxu1 %vm679_vm0, %v2614_v42 }
 0x8dd   : > { %1313 = vst.msk [vmem:[#allocation5] sm:$0xff] %vm932_vm3, %v1309_v60  ;;  %1314 = vst.msk [vmem:[#allocation5 + $0x8] sm:$0xff] %vm932_vm3, %v1310_v62  ;;  %4325 = vmatprep.mubr.msk.f32.mxu1 %vm4840_vm1, %v4841_v13 }
 0x8de   : > { %1315 = vst.msk [vmem:[#allocation5 + $0x10] sm:$0xff] %vm932_vm3, %v1311_v63  ;;  %1316 = vst.msk [vmem:[#allocation5 + $0x18] sm:$0xff] %vm932_vm3, %v1312_v1 }
 0x8e4   : > { %v2838_v2 = vld [vmem:[#allocation5] sm:$0xff]  ;;  %v2839_v3 = vld [vmem:[#allocation5 + $0x8] sm:$0xff] }
 0x8e5   : > { %4319 = vmatpush3.xpose.msk.msra.mxu0 %vm932_vm3, %v2838_v2  ;;  %4324 = vmatpush3.xpose.msk.msra.mxu1 %vm932_vm3, %v2839_v3  ;;  %v2840_v50 = vld [vmem:[#allocation5 + $0x10] sm:$0xff]  ;;  %v2841_v51 = vld [vmem:[#allocation5 + $0x18] sm:$0xff] }
 0x8e6   : > { %4328 = vmatprep.subr.mxu0 %v4841_v13  ;;  %4333 = vmatprep.subr.mxu1 %v4841_v13 }
 0x9af   : > { %v2688_v4 = vpop.f32.mrb[16].mxu1 }
 0x9b0   : > { %2696 = vrot.lane.b32.xlu0 %v2688_v4, %s4844_s2  ;;  %2693 = vrot.lane.b32.xlu1 %v2688_v4, %s4843_s13  ;;  %v4317_v5 = vpop.f32.mrb[17].mxu1  ;;  %s5859_s2 = sld [smem:[#allocation37_spill]]  ;;  %s5861_s13 = sld [smem:[#allocation34_spill]] }
 0x9b4   : > { %2699 = vrot.lane.b32.xlu1 %v2688_v4, %s4842_s23  ;;  %s3939_s23 = sshll.u32 %s670_s18, 4  ;;  %s5739_s23 = int_to_ptr.vmem [resolvable:$true] %s3939_s23 }
 0x9b5   : > { %p4744_p4 = scmp.lt.s32.totalorder %s5739_s23, %s4742_s15 }
 0xa22   : > { %v2697_v0 = vpop.permute.xlu0 %2696  ;;  %v2694_v6 = vpop.permute.xlu1 %2693 }
 0xa23   : > { %v2702_v7 = vcombine.low %v2688_v4, %v2697_v0  ;;  %v2703_v8 = vcombine.high %v2688_v4, %v2697_v0 }
 0xa25   : > { %v2710_v16 = vrot.slane %v2702_v7, %v5283_v55  ;;  %v2717_v17 = vrot.slane %v2703_v8, %v5283_v55 }
 0xa26   : > { %v2700_v9 = vpop.permute.xlu1 %2699 }
 0xa27   : > { %v2718_v11 = vcombine.low %v2694_v6, %v2700_v9  ;;  %v2719_v15 = vcombine.high %v2694_v6, %v2700_v9 }
 0xa29   : > { %v2726_v18 = vrot.slane %v2718_v11, %v5283_v55  ;;  %v2733_v19 = vrot.slane %v2719_v15, %v5283_v55 }
 0xa2b   : > { %v2734_v21 = vcombine.low %v2710_v16, %v2726_v18  ;;  %v2735_v22 = vcombine.high %v2710_v16, %v2726_v18  ;;  %v2750_v23 = vcombine.low %v2717_v17, %v2733_v19  ;;  %v2751_v24 = vcombine.high %v2717_v17, %v2733_v19 }
 0xa2d   : > { %v2742_v25 = vrot.slane %v2734_v21, %v5296_v61  ;;  %v2749_v26 = vrot.slane %v2735_v22, %v5296_v61  ;;  %v2758_v27 = vrot.slane %v2750_v23, %v5296_v61  ;;  %v2765_v28 = vrot.slane %v2751_v24, %v5296_v61 }
 0xa2f   : > { %v2770_v29 = vcombine.low %v2742_v25, %v2749_v26  ;;  %v4113_v30 = vcombine.high %v2742_v25, %v2749_v26  ;;  %v2786_v31 = vcombine.low %v2758_v27, %v2765_v28  ;;  %v4114_v32 = vcombine.high %v2758_v27, %v2765_v28 }
 0xa31   : > { %v2777_v33 = vrot.slane %v2770_v29, %v5283_v55  ;;  %v2785_v34 = vrot.slane %v4113_v30, %v5283_v55  ;;  %v2793_v35 = vrot.slane %v2786_v31, %v5283_v55  ;;  %v2801_v36 = vrot.slane %v4114_v32, %v5283_v55 }
 0xa33   : > { %v2802_v45 = vcombine.low %v2777_v33, %v2785_v34  ;;  %v2803_v46 = vcombine.high %v2777_v33, %v2785_v34  ;;  %v2818_v37 = vcombine.low %v2793_v35, %v2801_v36  ;;  %v2819_v39 = vcombine.high %v2793_v35, %v2801_v36 }
 0xa35   : > { %v2810_v41 = vrot.slane %v2802_v45, %v5296_v61  ;;  %v2826_v43 = vrot.slane %v2818_v37, %v5296_v61  ;;  %v2817_v48 = vrot.slane %v2803_v46, %v5296_v61  ;;  %v2833_v49 = vrot.slane %v2819_v39, %v5296_v61 }
 0xa37   : > { %v2834_v44 = vcombine.low %v2810_v41, %v2826_v43  ;;  %v2835_v47 = vcombine.high %v2810_v41, %v2826_v43  ;;  %v2836_v54 = vcombine.low %v2817_v48, %v2833_v49  ;;  %v2837_v53 = vcombine.high %v2817_v48, %v2833_v49 }
 0xa39   : > { %4321 = vmatmul.mubr.msk.f32.vlgmr.msra.gmra.mrb[8].mxu0 %vm932_vm3, %v2834_v44  ;;  %4326 = vmatmul.mubr.msk.f32.vlgmr.msra.gmra.mrb[18].mxu1 %vm932_vm3, %v2835_v47 }
 0xa3a   : > { %4329 = vmatpush3.xpose.msk.msra.mxu0 %vm932_vm3, %v2840_v50  ;;  %4334 = vmatpush3.xpose.msk.msra.mxu1 %vm932_vm3, %v2841_v51 }
 0xa3b   : > { %4330 = vmatprep.mubr.msk.f32.mxu0 %vm4840_vm1, %v4841_v13  ;;  %4335 = vmatprep.mubr.msk.f32.mxu1 %vm4840_vm1, %v4841_v13 }
 0xa3c   : > { %4338 = vmatprep.subr.mxu0 %v4841_v13  ;;  %4343 = vmatprep.subr.mxu1 %v4841_v13 }
 0xa3d   : > { %4331 = vmatmul.mubr.msk.f32.vlgmr.msra.gmra.mrb[10].mxu0 %vm932_vm3, %v2836_v54  ;;  %4336 = vmatmul.mubr.msk.f32.vlgmr.msra.gmra.mrb[20].mxu1 %vm932_vm3, %v2837_v53 }
 0xa3e   : > { %4340 = vmatprep.mubr.msk.f32.mxu0 %vm4840_vm1, %v4841_v13  ;;  %4345 = vmatprep.mubr.msk.f32.mxu1 %vm4840_vm1, %v4841_v13 }
 0xb0c   : > { %v2922_v56 = vpop.f32.mrb[8].mxu0  ;;  %v2998_v57 = vpop.f32.mrb[18].mxu1 }
 0xb0d   : > { %v4322_v38 = vpop.f32.mrb[9].mxu0  ;;  %v4327_v58 = vpop.f32.mrb[19].mxu1  ;;  %v3154_v59 = vsel %vm932_vm3, %v2922_v56, -inf  ;;  %v3157_v42 = vsel %vm932_vm3, %v2998_v57, -inf }
 0xb0e   : > { %3155 = vmax.xlane.f32.xlu0 %v3154_v59  ;;  %3158 = vmax.xlane.f32.xlu1 %v3157_v42 }
 0xb10   : > { %v3074_v60 = vpop.f32.mrb[10].mxu0  ;;  %v3150_v62 = vpop.f32.mrb[20].mxu1 }
 0xb11   : > { %v4332_v63 = vpop.f32.mrb[11].mxu0  ;;  %v4337_v1 = vpop.f32.mrb[21].mxu1  ;;  %v3160_v2 = vsel %vm932_vm3, %v3074_v60, -inf  ;;  %v3163_v3 = vsel %vm932_vm3, %v3150_v62, -inf }
 0xb12   : > { %3161 = vmax.xlane.f32.xlu0 %v3160_v2 }
 0xb16   : > { %3164 = vmax.xlane.f32.xlu0 %v3163_v3 }
 0xb1f   : > { %1317 = vrot.lane.b32.xlu1 %v5262_v40, %s4847_s30 }
 0xb23   : > { %1321 = vrot.lane.b32.xlu1 %v5498_v20, %s4847_s30 }
 0xb27   : > { %1323 = vrot.lane.b32.xlu1 %v5492_v14, %s4847_s30 }
 0xb2c   : > { %1319 = vrot.lane.b32.xlu0 %v5490_v12, %s4847_s30  ;;  %s5862_s30 = sld [smem:[#allocation23_spill]] }
 0xb9b   : > { %v3156_v4 = vpop.xlane.xlu0 %3155  ;;  %v3159_v5 = vpop.xlane.xlu1 %3158 }
 0xb9c   : > { %v3166_v0 = vsub.f32 %v2922_v56, %v3156_v4  ;;  %v3167_v6 = vsub.f32 %v2998_v57, %v3159_v5 }
 0xb9e   : > { %v3170_v7 = vmul.f32 1.442695, %v3166_v0  ;;  %v3172_v8 = vmul.f32 1.442695, %v3167_v6 }
 0xb9f   : > { %v3162_v9 = vpop.xlane.xlu0 %3161  ;;  %v1318_v11 = vpop.permute.xlu1 %1317 }
 0xba0   : > { %4603 = vpow2.f32 %v3170_v7  ;;  %v3168_v15 = vsub.f32 %v3074_v60, %v3162_v9 }
 0xba1   : > { %4605 = vpow2.f32 %v3172_v8 }
 0xba2   : > { %v3174_v40 = vmul.f32 1.442695, %v3168_v15 }
 0xba3   : > { %v1322_v16 = vpop.permute.xlu1 %1321  ;;  %v3165_v20 = vpop.xlane.xlu0 %3164 }
 0xba4   : > { %4607 = vpow2.f32 %v3174_v40  ;;  %v3169_v17 = vsub.f32 %v3150_v62, %v3165_v20  ;;  %v1329_v14 = vcombine.low %v1318_v11, %v1322_v16  ;;  %v1330_v18 = vcombine.high %v1318_v11, %v1322_v16 }
 0xba6   : > { %v3176_v19 = vmul.f32 1.442695, %v3169_v17  ;;  %v1337_v25 = vrot.slane %v1329_v14, %v5283_v55  ;;  %v1344_v26 = vrot.slane %v1330_v18, %v5283_v55 }
 0xba7   : > { %v1324_v12 = vpop.permute.xlu1 %1323  ;;  %v1320_v21 = vpop.permute.xlu0 %1319 }
 0xba8   : > { %4609 = vpow2.f32 %v3176_v19  ;;  %v1345_v22 = vcombine.low %v1320_v21, %v1324_v12  ;;  %v1346_v23 = vcombine.high %v1320_v21, %v1324_v12  ;;  %v2846_v21 = vld [vmem:[#allocation12] sm:$0xff] }
 0xbaa   : > { %v5584_v24 = vpop.eup %4603  ;;  %v1353_v27 = vrot.slane %v1345_v22, %v5283_v55  ;;  %v1360_v28 = vrot.slane %v1346_v23, %v5283_v55  ;;  %v2847_v22 = vld [vmem:[#allocation12 + $0x8] sm:$0xff] }
 0xbab   : > { %v4606_v29 = vpop.eup %4605  ;;  %v3178_v30 = vsel %vm932_vm3, %v5584_v24, 0.0  ;;  %v4446_v23 = vpack.c.bf16 %v2847_v22, %v2846_v21 }
 0xbac   : > { %v1361_v31 = vcombine.low %v1337_v25, %v1353_v27  ;;  %v1362_v32 = vcombine.high %v1337_v25, %v1353_v27  ;;  %v1377_v33 = vcombine.low %v1344_v26, %v1360_v28  ;;  %v1378_v34 = vcombine.high %v1344_v26, %v1360_v28  ;;  %3179 = vadd.xlane.f32.xlu0 %v3178_v30 }
 0xbad   : > { %v3181_v35 = vsel %vm932_vm3, %v4606_v29, 0.0 }
 0xbae   : > { %v4608_v36 = vpop.eup %4607  ;;  %v1369_v45 = vrot.slane %v1361_v31, %v5296_v61  ;;  %v1376_v46 = vrot.slane %v1362_v32, %v5296_v61  ;;  %v1385_v37 = vrot.slane %v1377_v33, %v5296_v61  ;;  %v1392_v39 = vrot.slane %v1378_v34, %v5296_v61  ;;  %3182 = vadd.xlane.f32.xlu1 %v3181_v35 }
 0xbaf   : > { %v3184_v41 = vsel %vm932_vm3, %v4608_v36, 0.0 }
 0xbb0   : > { %v1397_v43 = vcombine.low %v1369_v45, %v1376_v46  ;;  %v4090_v44 = vcombine.high %v1369_v45, %v1376_v46  ;;  %v1413_v47 = vcombine.low %v1385_v37, %v1392_v39  ;;  %v4091_v48 = vcombine.high %v1385_v37, %v1392_v39  ;;  %3185 = vadd.xlane.f32.xlu0 %v3184_v41 }
 0xbb2   : > { %v4610_v49 = vpop.eup %4609  ;;  %v1404_v50 = vrot.slane %v1397_v43, %v5283_v55  ;;  %v1412_v51 = vrot.slane %v4090_v44, %v5283_v55  ;;  %v1420_v54 = vrot.slane %v1413_v47, %v5283_v55  ;;  %v1428_v53 = vrot.slane %v4091_v48, %v5283_v55  ;;  %v2848_v47 = vld [vmem:[#allocation12 + $0x10] sm:$0xff]  ;;  %v2849_v48 = vld [vmem:[#allocation12 + $0x18] sm:$0xff] }
 0xbb3   : > { %v3187_v56 = vsel %vm932_vm3, %v4610_v49, 0.0 }
 0xbb4   : > { %v1429_v57 = vcombine.low %v1404_v50, %v1412_v51  ;;  %v1430_v38 = vcombine.high %v1404_v50, %v1412_v51  ;;  %v1445_v58 = vcombine.low %v1420_v54, %v1428_v53  ;;  %v1446_v59 = vcombine.high %v1420_v54, %v1428_v53  ;;  %3188 = vadd.xlane.f32.xlu0 %v3187_v56 }
 0xbb5   : > { %v4449_v53 = vpack.c.bf16 %v2849_v48, %v2848_v47  ;;  %v3839_v47 = vld [vmem:[%s5859_s2 + $0x50] sm:$0xff]  ;;  %v3840_v48 = vld [vmem:[%s5859_s2 + $0x58] sm:$0xff] }
 0xbb6   : > { %v1437_v42 = vrot.slane %v1429_v57, %v5296_v61  ;;  %v1444_v60 = vrot.slane %v1430_v38, %v5296_v61  ;;  %v1453_v62 = vrot.slane %v1445_v58, %v5296_v61  ;;  %v1460_v63 = vrot.slane %v1446_v59, %v5296_v61 }
 0xbb8   : > { %v1461_v1 = vcombine.low %v1437_v42, %v1453_v62  ;;  %v1462_v2 = vcombine.high %v1437_v42, %v1453_v62  ;;  %v1463_v3 = vcombine.low %v1444_v60, %v1460_v63  ;;  %v1464_v4 = vcombine.high %v1444_v60, %v1460_v63 }
 0xbba   : > { %1465 = vst.msk [vmem:[#allocation6] sm:$0xff] %vm932_vm3, %v1461_v1  ;;  %1466 = vst.msk [vmem:[#allocation6 + $0x8] sm:$0xff] %vm932_vm3, %v1462_v2 }
 0xbbb   : > { %1467 = vst.msk [vmem:[#allocation6 + $0x10] sm:$0xff] %vm932_vm3, %v1463_v3  ;;  %1468 = vst.msk [vmem:[#allocation6 + $0x18] sm:$0xff] %vm932_vm3, %v1464_v4 }
 0xbc1   : > { %v2842_v5 = vld [vmem:[#allocation6] sm:$0xff]  ;;  %v2843_v0 = vld [vmem:[#allocation6 + $0x8] sm:$0xff] }
 0xbc2   : > { %4339 = vmatpush3.msra.mxu0 %v2842_v5  ;;  %4344 = vmatpush3.msra.mxu1 %v2843_v0  ;;  %v2844_v20 = vld [vmem:[#allocation6 + $0x10] sm:$0xff]  ;;  %v2845_v18 = vld [vmem:[#allocation6 + $0x18] sm:$0xff] }
 0xbc3   : > { %4348 = vmatprep.subr.mxu0 %v4841_v13  ;;  %4353 = vmatprep.subr.mxu1 %v4841_v13 }
 0xc39   : > { %v3180_v6 = vpop.xlane.xlu0 %3179 }
 0xc3a   : > { %4611 = vrcp.f32 %v3180_v6 }
 0xc3b   : > { %v3183_v7 = vpop.xlane.xlu1 %3182 }
 0xc3c   : > { %4613 = vrcp.f32 %v3183_v7 }
 0xc3d   : > { %v3186_v8 = vpop.xlane.xlu0 %3185 }
 0xc3e   : > { %4615 = vrcp.f32 %v3186_v8 }
 0xc41   : > { %v3189_v9 = vpop.xlane.xlu0 %3188 }
 0xc42   : > { %4617 = vrcp.f32 %v3189_v9 }
 0xc44   : > { %v4612_v11 = vpop.eup %4611 }
 0xc45   : > { %v3191_v15 = vmul.f32 %v4612_v11, %v5584_v24 }
 0xc46   : > { %v4614_v40 = vpop.eup %4613 }
 0xc47   : > { %v3193_v16 = vmul.f32 %v4614_v40, %v4606_v29  ;;  %4341 = vmatmul.mubr.msk.f32.vlgmr.msra.gmra.mrb[12].mxu0 %vm932_vm3, %v3191_v15 }
 0xc48   : > { %v4616_v17 = vpop.eup %4615  ;;  %4349 = vmatpush3.msra.mxu0 %v2844_v20  ;;  %4350 = vmatprep.mubr.msk.f32.mxu0 %vm4840_vm1, %v4841_v13 }
 0xc49   : > { %v3195_v14 = vmul.f32 %v4616_v17, %v4608_v36  ;;  %4346 = vmatmul.mubr.msk.f32.vlgmr.msra.gmra.mrb[22].mxu1 %vm932_vm3, %v3193_v16  ;;  %4445 = vmatprep.subr.bf16.mxu0 %v4839_v10 }
 0xc4a   : > { %4354 = vmatpush3.msra.mxu1 %v2845_v18  ;;  %4355 = vmatprep.mubr.msk.f32.mxu1 %vm4840_vm1, %v4841_v13 }
 0xc4b   : > { %4351 = vmatmul.mubr.msk.f32.vlgmr.msra.gmra.mrb[14].mxu0 %vm932_vm3, %v3195_v14  ;;  %4451 = vmatprep.subr.bf16.mxu1 %v4839_v10 }
 0xc4c   : > { %v4618_v19 = vpop.eup %4617  ;;  %4366 = vmatprep.mubr.msk.f32.mxu0 %vm4840_vm1, %v4841_v13  ;;  %4447 = vmatpush3.bf16.msra.mxu0 %v4446_v23 }
 0xc4d   : > { %v3197_v12 = vmul.f32 %v4618_v19, %v4610_v49  ;;  %4448 = vmatprep.subr.bf16.mxu0 %v4839_v10 }
 0xc4f   : > { %4356 = vmatmul.mubr.msk.f32.vlgmr.msra.gmra.mrb[24].mxu1 %vm932_vm3, %v3197_v12 }
 0xc50   : > { %4377 = vmatprep.mubr.msk.f32.mxu1 %vm4840_vm1, %v4841_v13  ;;  %4450 = vmatpush3.bf16.msra.mxu0 %v4449_v53 }
 0xc51   : > { %4457 = vmatprep.subr.bf16.mxu0 %v4839_v10 }
 0xd1a   : > { %v3267_v24 = vpop.f32.mrb[12].mxu0 }
 0xd1b   : > { %v4342_v25 = vpop.f32.mrb[13].mxu0 }
 0xd1c   : > { %v3340_v26 = vpop.f32.mrb[22].mxu1  ;;  %v3744_v25 = vld [vmem:[#allocation13] sm:$0xff] }
 0xd1d   : > { %v4347_v27 = vpop.f32.mrb[23].mxu1 }
 0xd1e   : > { %v3413_v28 = vpop.f32.mrb[14].mxu0  ;;  %v3746_v27 = vld [vmem:[#allocation13 + $0x10] sm:$0xff] }
 0xd1f   : > { %v3490_v29 = vcombine.low %v3267_v24, %v3413_v28  ;;  %v3491_v30 = vcombine.high %v3267_v24, %v3413_v28  ;;  %v4352_v31 = vpop.f32.mrb[15].mxu0 }
 0xd20   : > { %v3831_v31 = vld [vmem:[%s5859_s2 + $0x10] sm:$0xff] }
 0xd21   : > { %v3498_v36 = vrot.slane %v3490_v29, %v5283_v55  ;;  %v3505_v45 = vrot.slane %v3491_v30, %v5283_v55  ;;  %v3829_v29 = vld [vmem:[%s5859_s2] sm:$0xff]  ;;  %v3830_v30 = vld [vmem:[%s5859_s2 + $0x8] sm:$0xff] }
 0xd22   : > { %v3486_v32 = vpop.f32.mrb[24].mxu1 }
 0xd23   : > { %v3506_v33 = vcombine.low %v3340_v26, %v3486_v32  ;;  %v3507_v34 = vcombine.high %v3340_v26, %v3486_v32  ;;  %v4357_v35 = vpop.f32.mrb[25].mxu1  ;;  %v3745_v26 = vld [vmem:[#allocation13 + $0x8] sm:$0xff]  ;;  %v4458_v32 = vpack.c.bf16 %v3830_v30, %v3829_v29 }
 0xd24   : > { %v3833_v35 = vld [vmem:[%s5859_s2 + $0x20] sm:$0xff] }
 0xd25   : > { %v3514_v46 = vrot.slane %v3506_v33, %v5283_v55  ;;  %v3521_v37 = vrot.slane %v3507_v34, %v5283_v55  ;;  %v3832_v33 = vld [vmem:[%s5859_s2 + $0x18] sm:$0xff] }
 0xd26   : > { %v4461_v34 = vpack.c.bf16 %v3832_v33, %v3831_v31 }
 0xd27   : > { %v3522_v39 = vcombine.low %v3498_v36, %v3514_v46  ;;  %v3523_v41 = vcombine.high %v3498_v36, %v3514_v46  ;;  %v3538_v43 = vcombine.low %v3505_v45, %v3521_v37  ;;  %v3539_v44 = vcombine.high %v3505_v45, %v3521_v37  ;;  %v3834_v36 = vld [vmem:[%s5859_s2 + $0x28] sm:$0xff]  ;;  %v3835_v46 = vld [vmem:[%s5859_s2 + $0x30] sm:$0xff]  ;;  %v3836_v37 = vld [vmem:[%s5859_s2 + $0x38] sm:$0xff] }
 0xd28   : > { %v4464_v45 = vpack.c.bf16 %v3834_v36, %v3833_v35 }
 0xd29   : > { %v3530_v49 = vrot.slane %v3522_v39, %v5296_v61  ;;  %v3537_v50 = vrot.slane %v3523_v41, %v5296_v61  ;;  %v3546_v51 = vrot.slane %v3538_v43, %v5296_v61  ;;  %v3553_v54 = vrot.slane %v3539_v44, %v5296_v61  ;;  %v3837_v41 = vld [vmem:[%s5859_s2 + $0x40] sm:$0xff]  ;;  %v3838_v43 = vld [vmem:[%s5859_s2 + $0x48] sm:$0xff] }
 0xd2a   : > { %v4467_v39 = vpack.c.bf16 %v3836_v37, %v3835_v46  ;;  %v4470_v44 = vpack.c.bf16 %v3838_v43, %v3837_v41 }
 0xd2b   : > { %v3558_v56 = vcombine.low %v3530_v49, %v3537_v50  ;;  %v4127_v57 = vcombine.high %v3530_v49, %v3537_v50  ;;  %v3574_v38 = vcombine.low %v3546_v51, %v3553_v54  ;;  %v4128_v58 = vcombine.high %v3546_v51, %v3553_v54  ;;  %v3841_v50 = vld [vmem:[%s5859_s2 + $0x60] sm:$0xff]  ;;  %v3842_v51 = vld [vmem:[%s5859_s2 + $0x68] sm:$0xff] }
 0xd2c   : > { %v4473_v49 = vpack.c.bf16 %v3840_v48, %v3839_v47  ;;  %v4476_v54 = vpack.c.bf16 %v3842_v51, %v3841_v50 }
 0xd2d   : > { %v3565_v59 = vrot.slane %v3558_v56, %v5283_v55  ;;  %v3573_v42 = vrot.slane %v4127_v57, %v5283_v55  ;;  %v3581_v60 = vrot.slane %v3574_v38, %v5283_v55  ;;  %v3589_v62 = vrot.slane %v4128_v58, %v5283_v55  ;;  %v4130_v58 = vld [vmem:[%s5860_s27] ss:$0 sm:$0xff]  ;;  %s4136_s27 = sshll.u32 %s5862_s30, 7  ;;  %s4737_s30 = scalar_lea.vmem %s5739_s23, 128 }
 0xd2e   : > { %p4738_p1 = scmp.ne.s32.totalorder %s5739_s23, %s4737_s30  ;;  %p4745_p9 = scmp.lt.s32.totalorder %s4743_s1, %s4737_s30 }
 0xd2f   : > { %v3591_v63 = vcombine.high %v3565_v59, %v3573_v42  ;;  %v3607_v1 = vcombine.high %v3581_v60, %v3589_v62  ;;  %v3590_v2 = vcombine.low %v3565_v59, %v3573_v42  ;;  %v3606_v3 = vcombine.low %v3581_v60, %v3589_v62  ;;  %v4131_v42 = vld [vmem:[%s5861_s13] ss:$0 sm:$0xff] }
 0xd30   : > { %p4739_p10 = pnand %p4738_p1, %p5867_p6  ;;  %p4746_p5 = por %p4745_p9, %p4744_p4 }
 0xd31   : > { %v3605_v4 = vrot.slane %v3591_v63, %v5296_v61  ;;  %v3621_v5 = vrot.slane %v3607_v1, %v5296_v61  ;;  %v3598_v0 = vrot.slane %v3590_v2, %v5296_v61  ;;  %v3614_v6 = vrot.slane %v3606_v3, %v5296_v61  ;;  %v3844_v63 = vld [vmem:[%s5859_s2 + $0x78] sm:$0xff]  ;;  %v4132_v2 = vld [vmem:[%s5863_s17] ss:$0 sm:$0xff] }
 0xd32   : > { %p4740_p3 = pneg %p4739_p10 }
 0xd33   : > { %v3624_v7 = vcombine.low %v3605_v4, %v3621_v5  ;;  %v3623_v8 = vcombine.high %v3598_v0, %v3614_v6  ;;  %v3625_v9 = vcombine.high %v3605_v4, %v3621_v5  ;;  %v3622_v11 = vcombine.low %v3598_v0, %v3614_v6  ;;  %v4134_v6 = vld [vmem:[%s5865_s29] ss:$0 sm:$0xff] }
 0xd34   : > { %p4747_p7 = pnand %p4746_p5, %p4740_p3 }
 0xd35   : > { %3631 = vrot.lane.b32.xlu0 %v3624_v7, %s4848_s11  ;;  %3627 = vrot.lane.b32.xlu1 %v3623_v8, %s4849_s20  ;;  %s5866_s20 = sld [smem:[#allocation39_spill]] }
 0xd39   : > { %3635 = vrot.lane.b32.xlu1 %v3625_v9, %s4850_s12 }
 0xd3b   : > { %s5737_s12 = scalar_lea.hbm %s5866_s20, %s4136_s27 }
 0xda7   : > { %v3628_v55 = vpop.permute.xlu1 %3627  ;;  %v3632_v15 = vpop.permute.xlu0 %3631 }
 0xda8   : > { %v3638_v40 = vsel %vm932_vm3, %v3622_v11, %v3628_v55 }
 0xda9   : > { %v3639_v20 = vsel %vm2507_vm4, %v3638_v40, %v3632_v15 }
 0xdab   : > { %v3636_v16 = vpop.permute.xlu1 %3635 }
 0xdac   : > { %v3640_v17 = vsel %vm2509_vm5, %v3639_v20, %v3636_v16 }
 0xdad   : > { %4367 = vmatmul.mubr.msk.f32.vlgmr.msra.gmra.mrb[16].mxu0 %vm679_vm0, %v3640_v17 }
 0xdae   : > { %4412 = vmatprep.mubr.msk.f32.mxu0 %vm4840_vm1, %v4841_v13  ;;  %v4452_v13 = vpack.c.bf16 %v3745_v26, %v3744_v25  ;;  %4459 = vmatpush3.bf16.msra.mxu0 %v4458_v32 }
 0xdaf   : > { %4460 = vmatprep.subr.bf16.mxu0 %v4839_v10 }
 0xdb0   : > { %4453 = vmatpush3.bf16.msra.mxu1 %v4452_v13 }
 0xdb1   : > { %4454 = vmatprep.subr.bf16.mxu1 %v4839_v10 }
 0xdb2   : > { %4462 = vmatpush3.bf16.msra.mxu0 %v4461_v34 }
 0xdb3   : > { %4463 = vmatprep.subr.bf16.mxu0 %v4839_v10 }
 0xdb6   : > { %4465 = vmatpush3.bf16.msra.mxu0 %v4464_v45 }
 0xdb7   : > { %4466 = vmatprep.subr.bf16.mxu0 %v4839_v10 }
 0xdba   : > { %4468 = vmatpush3.bf16.msra.mxu0 %v4467_v39 }
 0xdbb   : > { %4469 = vmatprep.subr.bf16.mxu0 %v4839_v10 }
 0xdbe   : > { %4471 = vmatpush3.bf16.msra.mxu0 %v4470_v44 }
 0xdbf   : > { %4472 = vmatprep.subr.bf16.mxu0 %v4839_v10 }
 0xdc2   : > { %4474 = vmatpush3.bf16.msra.mxu0 %v4473_v49 }
 0xdc3   : > { %4475 = vmatprep.subr.bf16.mxu0 %v4839_v10 }
 0xdc6   : > { %4477 = vmatpush3.bf16.msra.mxu0 %v4476_v54 }
 0xdc7   : > { %4478 = vmatprep.subr.bf16.mxu0 %v4839_v10  ;;  %v3843_v10 = vld [vmem:[%s5859_s2 + $0x70] sm:$0xff] }
 0xdc8   : > { %v4479_v1 = vpack.c.bf16 %v3844_v63, %v3843_v10 }
 0xdca   : > { %4480 = vmatpush3.bf16.msra.mxu0 %v4479_v1 }
 0xe80   : > { %v3710_v61 = vpop.f32.mrb[16].mxu0 }
 0xe81   : > { %v5656_v14 = vadd.f32 %v3710_v61, %v5464_v52  ;;  %v4368_v18 = vpop.f32.mrb[17].mxu0  ;;  %v3747_v52 = vld [vmem:[#allocation13 + $0x18] sm:$0xff] }
 0xe82   : > { %v4455_v28 = vpack.c.bf16 %v3747_v52, %v3746_v27 }
 0xe83   : > { %v3717_v19 = vsel %vm679_vm0, %v5656_v14, 0.0 }
 0xe84   : > { %3718 = vadd.xlane.f32.xlu1 %v3717_v19  ;;  %4456 = vmatpush3.bf16.msra.mxu1 %v4455_v28 }
 0xf11   : > { %v3719_v12 = vpop.xlane.xlu1 %3718 }
 0xf12   : > { %v3720_v21 = vmul.f32 0.03125, %v3719_v12 }
 0xf14   : > { %v3721_v22 = vsub.f32 %v5656_v14, %v3720_v21 }
 0xf16   : > { %v3722_v23 = vmul.f32 %v3721_v22, %v3721_v22 }
 0xf18   : > { %v3723_v24 = vsel %vm679_vm0, %v3722_v23, 0.0 }
 0xf19   : > { %3724 = vadd.xlane.f32.xlu0 %v3723_v24 }
 0xfa6   : > { %v3725_v53 = vpop.xlane.xlu0 %3724 }
 0xfa7   : > { %v3726_v56 = vmul.f32 0.03125, %v3725_v53 }
 0xfa9   : > { %v3727_v57 = vadd.f32 1e-05, %v3726_v56 }
 0xfab   : > { %4619 = vrsqrt.f32 %v3727_v57 }
 0xfb5   : > { %v4620_v38 = vpop.eup %4619 }
 0xfb6   : > { %v3729_v59 = vmul.f32 %v4620_v38, %v3721_v22 }
 0xfb8   : > { %v3736_v60 = vmul.f32 %v4130_v58, %v3729_v59 }
 0xfba   : > { %v3743_v62 = vadd.f32 %v4131_v42, %v3736_v60 }
 0xfbc   : > { %4378 = vmatmul.mubr.msk.f32.vlgmr.msra.gmra.mrb[26].mxu1 %vm679_vm0, %v3743_v62 }
0x108f   : > { %v3824_v3 = vpop.f32.mrb[26].mxu1 }
0x1090   : > { %v3825_v4 = vadd.f32 %v4132_v2, %v3824_v3  ;;  %v4379_v5 = vpop.f32.mrb[27].mxu1 }
0x1092   : > { %v3828_v0 = vmax.f32 %v3825_v4, 0.0 }
0x1094   : > { %4413 = vmatmul.mubr.f32.vlgmr.msra.gmra.mrb[18].mxu0 %v3828_v0 }
0x1167   : > { %v3918_v7 = vpop.f32.mrb[18].mxu0 }
0x1168   : > { %v3919_v8 = vadd.f32 %v4134_v6, %v3918_v7  ;;  %v4414_v9 = vpop.f32.mrb[19].mxu0 }
0x116a   : > { %v3922_v11 = vadd.f32 %v3919_v8, %v5656_v14 }
0x116c   : > { %3923 = vst.msk [vmem:[%s670_s18] sm:$0xff] %vm679_vm0, %v3922_v11 }
0x116d   : > { %4750 = shalt.err (!%p4747_p7)
}
0x116e   : > { %s4751_s16 = scalar_lea.hbm %s5737_s12, 128  ;;  %s4755_s22 = scalar_lea.hbm %s5866_s20, 256 }
0x116f   : > { %p4752_p13 = scmp.ne.s32.totalorder %s5737_s12, %s4751_s16  ;;  %p4756_p2 = scmp.lt.u32.totalorder %s5737_s12, %s5866_s20 }
0x1170   : > { %p4757_p12 = scmp.lt.u32.totalorder %s4755_s22, %s4751_s16  ;;  %p4759_p1 = scmp.lt.u32.totalorder %s4751_s16, %s5737_s12 }
0x1171   : > { %p4753_p8 = pnand %p4752_p13, %p5867_p6 }
0x1172   : > { %p4758_p0 = por %p4757_p12, %p4756_p2 }
0x1173   : > { %p4754_p11 = pneg %p4753_p8 }
0x1174   : > { %p4760_p10 = por %p4759_p1, %p4758_p0 }
0x1176   : > { %p4761_p3 = pnand %p4760_p10, %p4754_p11 }
0x1178   : > { %4764 = shalt.err (!%p4761_p3)
}
0x1179   : > { %4493 = dma.vmem_to_hbm [thread:$0]  (%p5867_p6), %s5739_s23, 128, %s5737_s12, %s3925_s21  }
0x117a PF: > { %s5868_s18 = sld [smem:[#allocation21_spill]]  ;;  %s5869_s13 = sld [smem:[#allocation25_spill]] }
0x117b   : > { %p5871_p9 = scmp.ge.s32.totalorder %s4831_s19, 2 }
0x1180   : > { %s3951_s11 = sand.u32 1, %s5868_s18   ;;  %p5870_p4 = scmp.ne.s32.totalorder %s5869_s13, 0 }
0x1181   : > { %s3952_s30 = scalar_lea.sflag [#allocation9], %s3951_s11 }
0x1182   : > { %p4510_p5 = pnand %p5871_p9, %p5870_p4 }
0x1184   : > { %4806 = dma.done.wait (!%p4510_p5), %s3952_s30, 128  }
0x1185   : > { %4808 = vsyncadd (!%p4510_p5), %s3952_s30, 4294967168  ;;  %s38_s19 = sadd.s32 1, %s4831_s19   ;;  %s5872_s25 = sld [smem:[#allocation22_spill]] }
0x1186   : > { %p35_p7 = scmp.ge.s32.totalorder %s38_s19, 4   ;;  %s5873_s29 = sld [smem:[#allocation28_spill]] }
0x1187   : > { %s5874_s30 = sld [smem:[#allocation24_spill]]  ;;  %s5875_s0 = sld [smem:[#allocation26_spill]] }
0x1188   : > { %s5876_s27 = smov %s4815_s28  ;;  %37 = sbr.rel (!%p35_p7) target bundleno = 21 (0x15), region = 164 }
0x118b   : > { %s5877_s28 = smov %s5872_s25 }
0x118f   :  { %3957 = vsyncpa [#allocation8], 1 }
0x1190   :  { %3959 = vsyncpa [#allocation8 + $0x1], 1 }
0x1191   :  { %3960 = vsyncpa [#allocation11], 1 }
0x1192   :  { %3962 = vsyncpa [#allocation11 + $0x1], 1 }
0x1193   :  { %3963 = vsyncpa [#allocation14], 1 }
0x1194   :  { %3964 = vsyncpa [#allocation9], 1 }
0x1195   :  { %3966 = vsyncpa [#allocation9 + $0x1], 1 }

</bundles_post_ra>
